<compile_context>
chip_gen: v7x
topology: tpu7x:2x2x1
jax: 0.10.0
libtpu: 0.0.40
codegen_flags: <defaults>
</compile_context>

<pallas_src>
import functools
import math

import jax
import jax.numpy as jnp
from jax.experimental import pallas as pl
from jax.experimental.pallas import tpu as pltpu


# ---- indices into the stacked weight slabs ----------------------------------
_W_G1B, _W_G2A, _W_G2B = 0, 1, 2
_N_MATS_FIXED = 3
_MATS_PER_LAYER = 3          # wvo, wf1, wf2

_B_L1, _B_G1A, _B_G1B, _B_G2A, _B_G2B = 0, 1, 2, 3, 4
_N_VECS_FIXED = 5
_VECS_PER_LAYER = 7          # bvo, ln1_g, ln1_b, bf1, bf2, ln2_g, ln2_b


def gin_policy_kernel(
    orig_ref,      # (R, 6)      first-6 raw features, tb graphs flattened
    lidar_ref,     # (R, LIDAR)
    rows_ref,      # (8, R)      row0 = x^T, row1 = y^T, row2 = gid^T, rest 0
    gidc_ref,      # (R, 1)      graph id per row (column form)
    w_l1_ref, w_l2_ref, b_l2_ref,        # lidar MLP (b_l1 lives in the bias slab)
    w_g1o_ref, w_g1l_ref,                # split first GIN linear (6 / lidar cols)
    wmat_ref,      # (3 + 3L, H, H)      stacked square weights
    bvec_ref,      # (5 + 7L, 1, H)      stacked biases / LayerNorm params
    w_fc_ref, b_fc_ref,                  # final Linear, lane-padded to 128
    out_ref,       # (R, OUT_PAD)
    *, num_layers, max_distance=10.0,
):
    f32, bf16 = jnp.float32, jnp.bfloat16
    orig = orig_ref[...]
    lidar = lidar_ref[...]
    rows = rows_ref[...]
    r = orig.shape[0]

    def mm(x, w, b):
        return jnp.dot(x, w, preferred_element_type=f32) + b

    def relu(x):
        return jnp.maximum(x, 0.0)

    # ---- lidar MLP over all tb*N rows at once --------------------------------
    h = relu(mm(lidar, w_l1_ref[...], bvec_ref[_B_L1]))
    lid_feat = relu(mm(h, w_l2_ref[...], b_l2_ref[...]))          # (R, PL)

    # ---- block-diagonal adjacency (fov = pi -> angle test always true) -------
    # dx/dy from (R,1) columns vs. pre-transposed (1,R) rows: no XLU transposes.
    # Squared-distance compare stays in f32, no sqrt.
    dx = orig[:, 0:1] - rows[0:1, :]
    dy = orig[:, 1:2] - rows[1:2, :]
    d2 = dx * dx + dy * dy
    same_graph = gidc_ref[...] == rows[2:3, :]
    ii = jax.lax.broadcasted_iota(jnp.int32, (r, r), 0)
    jj = jax.lax.broadcasted_iota(jnp.int32, (r, r), 1)
    keep = (d2 <= max_distance * max_distance) & same_graph & (ii != jj)
    adj = jnp.where(keep, 1.0, 0.0).astype(bf16)      # exact 0/1 in bf16

    # GIN aggregation (eps = 0): x + sum_neighbors x.  adj is symmetric
    # (fov == pi) so no transpose; the (R,R) matmuls run in bf16 on the MXU
    # with f32 accumulation.
    def aggregate(x):
        return x + jnp.dot(adj, x.astype(bf16), preferred_element_type=f32)

    # ---- GINConv 1 (first linear split: no lane concat needed) ---------------
    agg_o = aggregate(orig)
    agg_l = aggregate(lid_feat)
    h = jnp.dot(agg_o, w_g1o_ref[...], preferred_element_type=f32)
    h = h + jnp.dot(agg_l, w_g1l_ref[...], preferred_element_type=f32)
    h = relu(h + bvec_ref[_B_G1A])
    h = relu(mm(h, wmat_ref[_W_G1B], bvec_ref[_B_G1B]))

    # ---- GINConv 2 ------------------------------------------------------------
    agg = aggregate(h)
    x = relu(mm(agg, wmat_ref[_W_G2A], bvec_ref[_B_G2A]))
    x = relu(mm(x, wmat_ref[_W_G2B], bvec_ref[_B_G2B]))

    # ---- Transformer encoder, sequence length 1 per node ----------------------
    # Softmax over one key == 1 => attention == out_proj(value_proj(x)); the two
    # projections are pre-fused into a single (H,H) matmul in prepare_params.
    def layernorm(v, g, b):
        mu = jnp.mean(v, axis=-1, keepdims=True)
        var = jnp.mean((v - mu) * (v - mu), axis=-1, keepdims=True)
        return (v - mu) * jax.lax.rsqrt(var + 1e-5) * g + b

    for l in range(num_layers):
        wl = _N_MATS_FIXED + _MATS_PER_LAYER * l
        bl = _N_VECS_FIXED + _VECS_PER_LAYER * l
        attn = mm(x, wmat_ref[wl + 0], bvec_ref[bl + 0])
        x = layernorm(x + attn, bvec_ref[bl + 1], bvec_ref[bl + 2])
        ff = mm(relu(mm(x, wmat_ref[wl + 1], bvec_ref[bl + 3])),
                wmat_ref[wl + 2], bvec_ref[bl + 4])
        x = layernorm(x + ff, bvec_ref[bl + 5], bvec_ref[bl + 6])

    # ---- final projection (lane-padded weights -> unmasked lane-dense store) --
    out_ref[...] = mm(x, w_fc_ref[...], b_fc_ref[...])


def _zero_index(b, *, ndim):
    return (0,) * ndim


def _cdiv(a, b):
    return -(-a // b)


def _choose_tb(batch, num_agents, target_rows):
    """Graphs per grid step: R = tb*N ~ target_rows, sublane aligned, >=2 steps
    for large problems (v7x megacore)."""
    tb = max(1, min(max(1, target_rows // num_agents), batch))
    if batch * num_agents > target_rows and batch >= 2:
        tb = min(tb, _cdiv(batch, 2))
    align = 8 // math.gcd(num_agents, 8)          # R must be a multiple of 8
    tb = _cdiv(tb, align) * align
    return tb


def prepare_params(params, num_layers):
    """One-time parameter preprocessing (hoisted out of the per-call path)."""
    H = params["w_fc"].shape[0]
    OUT = params["w_fc"].shape[1]
    out_pad = _cdiv(OUT, 128) * 128

    # Split the first GIN linear so the kernel never concatenates along lanes.
    w_g1o = params["w_g1a"][:6, :]
    w_g1l = params["w_g1a"][6:, :]

    # Fuse seq-len-1 attention: out_proj(value_proj(x)) == x @ (Wv@Wo) + (bv@Wo + bo).
    wvo = jnp.einsum("lij,ljk->lik", params["wv"], params["wo"])
    bvo = jnp.einsum("lij,ljk->lik", params["bv"], params["wo"]) + params["bo"]

    # Lane-pad the final projection so the output store is unmasked/lane dense.
    w_fc = jnp.pad(params["w_fc"], ((0, 0), (0, out_pad - OUT)))
    b_fc = jnp.pad(params["b_fc"], ((0, 0), (0, out_pad - OUT)))

    # Stack every (H,H) matrix into one slab and every (1,H) vector into another.
    mats = [params["w_g1b"], params["w_g2a"], params["w_g2b"]]
    vecs = [params["b_l1"], params["b_g1a"], params["b_g1b"],
            params["b_g2a"], params["b_g2b"]]
    for l in range(num_layers):
        mats += [wvo[l], params["wf1"][l], params["wf2"][l]]
        vecs += [bvo[l], params["ln1_g"][l], params["ln1_b"][l],
                 params["bf1"][l], params["bf2"][l],
                 params["ln2_g"][l], params["ln2_b"][l]]
    wmat = jnp.stack(mats, axis=0)                                 # (3+3L, H, H)
    bvec = jnp.stack([v.reshape(1, H) for v in vecs], axis=0)      # (5+7L, 1, H)

    return {
        "w_l1": params["w_l1"], "w_l2": params["w_l2"], "b_l2": params["b_l2"],
        "w_g1o": w_g1o, "w_g1l": w_g1l,
        "wmat": wmat, "bvec": bvec,
        "w_fc": w_fc, "b_fc": b_fc,
    }


def gin_policy_forward(data, prepared, *, num_layers, out_dim, target_rows=512):
    B, N, F = data.shape
    LIDAR = F - 6
    out_pad = prepared["w_fc"].shape[1]

    tb = _choose_tb(B, N, target_rows)
    n_steps = _cdiv(B, tb)
    b_pad = n_steps * tb
    R = tb * N

    data = data.astype(jnp.float32)
    if b_pad != B:
        data = jnp.concatenate(
            [data, jnp.zeros((b_pad - B, N, F), jnp.float32)], axis=0)
    flat = data.reshape(b_pad * N, F)
    orig = flat[:, :6]
    lidar = flat[:, 6:]

    # Global graph id per row (f32 equality is exact for < 2^24 graphs).
    gid = jnp.repeat(jnp.arange(b_pad, dtype=jnp.float32), N)      # (b_pad*N,)
    gid_col = gid.reshape(b_pad * N, 1)

    # Pre-transposed per-step row slab: row0 = x^T, row1 = y^T, row2 = gid^T.
    xy_t = jnp.transpose(flat[:, :2].reshape(n_steps, R, 2), (0, 2, 1))
    row_slab = jnp.concatenate(
        [xy_t, gid.reshape(n_steps, 1, R),
         jnp.zeros((n_steps, 5, R), jnp.float32)], axis=1)         # (n_steps, 8, R)

    weight_names = ("w_l1", "w_l2", "b_l2", "w_g1o", "w_g1l",
                    "wmat", "bvec", "w_fc", "b_fc")
    weight_args = [prepared[k] for k in weight_names]

    in_specs = [
        pl.BlockSpec((R, 6), lambda b: (b, 0)),
        pl.BlockSpec((R, LIDAR), lambda b: (b, 0)),
        pl.BlockSpec((None, 8, R), lambda b: (b, 0, 0)),
        pl.BlockSpec((R, 1), lambda b: (b, 0)),
    ]
    for a in weight_args:
        in_specs.append(
            pl.BlockSpec(a.shape, functools.partial(_zero_index, ndim=a.ndim)))

    kernel = functools.partial(gin_policy_kernel, num_layers=num_layers)
    out = pl.pallas_call(
        kernel,
        out_shape=jax.ShapeDtypeStruct((b_pad * N, out_pad), jnp.float32),
        grid=(n_steps,),
        in_specs=in_specs,
        out_specs=pl.BlockSpec((R, out_pad), lambda b: (b, 0)),
        compiler_params=pltpu.CompilerParams(
            dimension_semantics=("parallel",),
            vmem_limit_bytes=48 * 1024 * 1024),
    )(orig, lidar, row_slab, gid_col, *weight_args)

    return out.reshape(b_pad, N, out_pad)[:B, :, :out_dim]


def make_params(key, lidar_dim, processed_lidar_dim, hidden_dim, output_dim,
                num_layers):
    keys = iter(jax.random.split(key, 64))
    H, PL_, LD, OUT, L = (hidden_dim, processed_lidar_dim, lidar_dim,
                          output_dim, num_layers)

    def w(shape, scale=0.1):
        return (scale * jax.random.normal(next(keys), shape)).astype(jnp.float32)

    return {
        # lidar_fc
        "w_l1": w((LD, H)), "b_l1": w((1, H)),
        "w_l2": w((H, PL_)), "b_l2": w((1, PL_)),
        # GINConv 1 MLP (in = processed_lidar_dim + 6)
        "w_g1a": w((PL_ + 6, H)), "b_g1a": w((1, H)),
        "w_g1b": w((H, H)), "b_g1b": w((1, H)),
        # GINConv 2 MLP
        "w_g2a": w((H, H)), "b_g2a": w((1, H)),
        "w_g2b": w((H, H)), "b_g2b": w((1, H)),
        # transformer encoder layers (stacked on leading L axis)
        "wv": w((L, H, H)), "bv": w((L, 1, H)),
        "wo": w((L, H, H)), "bo": w((L, 1, H)),
        "ln1_g": jnp.ones((L, 1, H), jnp.float32),
        "ln1_b": jnp.zeros((L, 1, H), jnp.float32),
        "wf1": w((L, H, H)), "bf1": w((L, 1, H)),
        "wf2": w((L, H, H)), "bf2": w((L, 1, H)),
        "ln2_g": jnp.ones((L, 1, H), jnp.float32),
        "ln2_b": jnp.zeros((L, 1, H), jnp.float32),
        # final Linear(hidden_dim, output_dim)
        "w_fc": w((H, OUT)), "b_fc": w((1, OUT)),
    }


if __name__ == "__main__":
    # Small shapes consistent with the module's forward.
    B, N = 2, 8                       # batch, num_agents
    LIDAR_DIM = 20
    PROCESSED_LIDAR_DIM = 20
    HIDDEN_DIM = 32
    OUTPUT_DIM = 2
    NUM_LAYERS = 2
    NHEAD = 4                         # unused: seq-len-1 attention collapses

    key = jax.random.PRNGKey(0)
    k_data, k_params = jax.random.split(key)
    data = jax.random.normal(k_data, (B, N, 6 + LIDAR_DIM), dtype=jnp.float32)
    raw_params = make_params(k_params, LIDAR_DIM, PROCESSED_LIDAR_DIM,
                             HIDDEN_DIM, OUTPUT_DIM, NUM_LAYERS)

    prepared = prepare_params(raw_params, NUM_LAYERS)   # one-time preprocessing

    fwd = jax.jit(gin_policy_forward,
                  static_argnames=("num_layers", "out_dim", "target_rows"))
    out = fwd(data, prepared, num_layers=NUM_LAYERS, out_dim=OUTPUT_DIM)
    out = jax.block_until_ready(out)
    assert out.shape == (B, N, OUTPUT_DIM)
    assert bool(jnp.all(jnp.isfinite(out)))
    print("KERNEL_OK")
</pallas_src>

<mosaic_0001>
module attributes {stable_mosaic.version = 11 : i64} {
  func.func @gin_policy_kernel(%arg0: i32, %arg1: memref<16x6xf32, #tpu.memory_space<vmem>>, %arg2: memref<16x20xf32, #tpu.memory_space<vmem>>, %arg3: memref<1x8x16xf32, #tpu.memory_space<vmem>>, %arg4: memref<16x1xf32, #tpu.memory_space<vmem>>, %arg5: memref<20x32xf32, #tpu.memory_space<vmem>>, %arg6: memref<32x20xf32, #tpu.memory_space<vmem>>, %arg7: memref<1x20xf32, #tpu.memory_space<vmem>>, %arg8: memref<6x32xf32, #tpu.memory_space<vmem>>, %arg9: memref<20x32xf32, #tpu.memory_space<vmem>>, %arg10: memref<9x32x32xf32, #tpu.memory_space<vmem>>, %arg11: memref<19x1x32xf32, #tpu.memory_space<vmem>>, %arg12: memref<32x128xf32, #tpu.memory_space<vmem>>, %arg13: memref<1x128xf32, #tpu.memory_space<vmem>>, %arg14: memref<16x128xf32, #tpu.memory_space<vmem>>) attributes {dimension_semantics = [#tpu.dimension_semantics<parallel>], iteration_bounds = array<i64: 1>, scalar_prefetch = 0 : i64, scratch_operands = 0 : i64, tpu.core_type = #tpu.core_type<tc>, window_params = [{transform_indices = @transform_0, window_bounds = array<i64: 16, 6>}, {transform_indices = @transform_1, window_bounds = array<i64: 16, 20>}, {transform_indices = @transform_2, window_bounds = array<i64: 1, 8, 16>}, {transform_indices = @transform_3, window_bounds = array<i64: 16, 1>}, {pipeline_mode = #tpu.pipeline_mode<synchronous>, transform_indices = @transform_4, window_bounds = array<i64: 20, 32>}, {pipeline_mode = #tpu.pipeline_mode<synchronous>, transform_indices = @transform_5, window_bounds = array<i64: 32, 20>}, {pipeline_mode = #tpu.pipeline_mode<synchronous>, transform_indices = @transform_6, window_bounds = array<i64: 1, 20>}, {pipeline_mode = #tpu.pipeline_mode<synchronous>, transform_indices = @transform_7, window_bounds = array<i64: 6, 32>}, {pipeline_mode = #tpu.pipeline_mode<synchronous>, transform_indices = @transform_8, window_bounds = array<i64: 20, 32>}, {pipeline_mode = #tpu.pipeline_mode<synchronous>, transform_indices = @transform_9, window_bounds = array<i64: 9, 32, 32>}, {pipeline_mode = #tpu.pipeline_mode<synchronous>, transform_indices = @transform_10, window_bounds = array<i64: 19, 1, 32>}, {pipeline_mode = #tpu.pipeline_mode<synchronous>, transform_indices = @transform_11, window_bounds = array<i64: 32, 128>}, {pipeline_mode = #tpu.pipeline_mode<synchronous>, transform_indices = @transform_12, window_bounds = array<i64: 1, 128>}, {transform_indices = @transform_13, window_bounds = array<i64: 16, 128>}]} {
    %c0 = arith.constant 0 : index
    %c0_0 = arith.constant 0 : index
    %0 = vector.load %arg1[%c0, %c0_0] : memref<16x6xf32, #tpu.memory_space<vmem>>, vector<16x6xf32>
    %c0_1 = arith.constant 0 : index
    %c0_2 = arith.constant 0 : index
    %1 = vector.load %arg2[%c0_1, %c0_2] : memref<16x20xf32, #tpu.memory_space<vmem>>, vector<16x20xf32>
    %c0_3 = arith.constant 0 : index
    %c0_4 = arith.constant 0 : index
    %c0_5 = arith.constant 0 : index
    %2 = vector.load %arg3[%c0_3, %c0_4, %c0_5] : memref<1x8x16xf32, #tpu.memory_space<vmem>>, vector<1x8x16xf32>
    %3 = vector.shape_cast %2 : vector<1x8x16xf32> to vector<8x16xf32>
    %c0_6 = arith.constant 0 : index
    %c0_7 = arith.constant 0 : index
    %4 = vector.load %arg5[%c0_6, %c0_7] : memref<20x32xf32, #tpu.memory_space<vmem>>, vector<20x32xf32>
    %c0_8 = arith.constant 0 : index
    %c0_9 = arith.constant 0 : index
    %c0_10 = arith.constant 0 : index
    %5 = vector.load %arg11[%c0_8, %c0_9, %c0_10] : memref<19x1x32xf32, #tpu.memory_space<vmem>>, vector<1x1x32xf32>
    %6 = vector.shape_cast %5 : vector<1x1x32xf32> to vector<1x32xf32>
    %cst = arith.constant dense<0.000000e+00> : vector<16x32xf32>
    %7 = tpu.matmul %1, %4, %cst {dimension_numbers = #tpu.dot_dimension_numbers<[1], [0], [0], [1], [0, 0, 1, 1], [], []>} : vector<16x20xf32>, vector<20x32xf32>, vector<16x32xf32> -> vector<16x32xf32>
    %8 = vector.broadcast %6 : vector<1x32xf32> to vector<16x32xf32>
    %9 = arith.addf %7, %8 : vector<16x32xf32>
    %cst_11 = arith.constant 0.000000e+00 : f32
    %10 = vector.broadcast %cst_11 : f32 to vector<16x32xf32>
    %11 = arith.maximumf %9, %10 : vector<16x32xf32>
    %c0_12 = arith.constant 0 : index
    %c0_13 = arith.constant 0 : index
    %12 = vector.load %arg6[%c0_12, %c0_13] : memref<32x20xf32, #tpu.memory_space<vmem>>, vector<32x20xf32>
    %c0_14 = arith.constant 0 : index
    %c0_15 = arith.constant 0 : index
    %13 = vector.load %arg7[%c0_14, %c0_15] : memref<1x20xf32, #tpu.memory_space<vmem>>, vector<1x20xf32>
    %cst_16 = arith.constant dense<0.000000e+00> : vector<16x20xf32>
    %14 = tpu.matmul %11, %12, %cst_16 {dimension_numbers = #tpu.dot_dimension_numbers<[1], [0], [0], [1], [0, 0, 1, 1], [], []>} : vector<16x32xf32>, vector<32x20xf32>, vector<16x20xf32> -> vector<16x20xf32>
    %15 = vector.broadcast %13 : vector<1x20xf32> to vector<16x20xf32>
    %16 = arith.addf %14, %15 : vector<16x20xf32>
    %cst_17 = arith.constant 0.000000e+00 : f32
    %17 = vector.broadcast %cst_17 : f32 to vector<16x20xf32>
    %18 = arith.maximumf %16, %17 : vector<16x20xf32>
    %19 = vector.extract_strided_slice %0 {offsets = [0, 0], sizes = [16, 1], strides = [1, 1]} : vector<16x6xf32> to vector<16x1xf32>
    %20 = vector.extract_strided_slice %3 {offsets = [0, 0], sizes = [1, 16], strides = [1, 1]} : vector<8x16xf32> to vector<1x16xf32>
    %21 = vector.broadcast %19 : vector<16x1xf32> to vector<16x16xf32>
    %22 = vector.broadcast %20 : vector<1x16xf32> to vector<16x16xf32>
    %23 = arith.subf %21, %22 : vector<16x16xf32>
    %24 = vector.extract_strided_slice %0 {offsets = [0, 1], sizes = [16, 1], strides = [1, 1]} : vector<16x6xf32> to vector<16x1xf32>
    %25 = vector.extract_strided_slice %3 {offsets = [1, 0], sizes = [1, 16], strides = [1, 1]} : vector<8x16xf32> to vector<1x16xf32>
    %26 = vector.broadcast %24 : vector<16x1xf32> to vector<16x16xf32>
    %27 = vector.broadcast %25 : vector<1x16xf32> to vector<16x16xf32>
    %28 = arith.subf %26, %27 : vector<16x16xf32>
    %29 = arith.mulf %23, %23 : vector<16x16xf32>
    %30 = arith.mulf %28, %28 : vector<16x16xf32>
    %31 = arith.addf %29, %30 : vector<16x16xf32>
    %c0_18 = arith.constant 0 : index
    %c0_19 = arith.constant 0 : index
    %32 = vector.load %arg4[%c0_18, %c0_19] : memref<16x1xf32, #tpu.memory_space<vmem>>, vector<16x1xf32>
    %33 = vector.extract_strided_slice %3 {offsets = [2, 0], sizes = [1, 16], strides = [1, 1]} : vector<8x16xf32> to vector<1x16xf32>
    %34 = vector.broadcast %32 : vector<16x1xf32> to vector<16x16xf32>
    %35 = vector.broadcast %33 : vector<1x16xf32> to vector<16x16xf32>
    %36 = arith.cmpf oeq, %34, %35 : vector<16x16xf32>
    %37 = tpu.iota {dimensions = array<i32: 0>} : vector<16x16xi32>
    %38 = tpu.iota {dimensions = array<i32: 1>} : vector<16x16xi32>
    %cst_20 = arith.constant 1.000000e+02 : f32
    %39 = vector.broadcast %cst_20 : f32 to vector<16x16xf32>
    %40 = arith.cmpf ole, %31, %39 : vector<16x16xf32>
    %41 = arith.andi %40, %36 : vector<16x16xi1>
    %42 = arith.cmpi ne, %37, %38 : vector<16x16xi32>
    %43 = arith.andi %41, %42 : vector<16x16xi1>
    %cst_21 = arith.constant 1.000000e+00 : f32
    %cst_22 = arith.constant 0.000000e+00 : f32
    %44 = vector.broadcast %cst_21 : f32 to vector<16x16xf32>
    %45 = vector.broadcast %cst_22 : f32 to vector<16x16xf32>
    %46 = arith.select %43, %44, %45 : vector<16x16xi1>, vector<16x16xf32>
    %47 = arith.truncf %46 : vector<16x16xf32> to vector<16x16xbf16>
    %48 = arith.truncf %0 : vector<16x6xf32> to vector<16x6xbf16>
    %cst_23 = arith.constant dense<0.000000e+00> : vector<16x6xf32>
    %49 = tpu.matmul %47, %48, %cst_23 {dimension_numbers = #tpu.dot_dimension_numbers<[1], [0], [0], [1], [0, 0, 1, 1], [], []>} : vector<16x16xbf16>, vector<16x6xbf16>, vector<16x6xf32> -> vector<16x6xf32>
    %50 = arith.addf %0, %49 : vector<16x6xf32>
    %51 = arith.truncf %18 : vector<16x20xf32> to vector<16x20xbf16>
    %cst_24 = arith.constant dense<0.000000e+00> : vector<16x20xf32>
    %52 = tpu.matmul %47, %51, %cst_24 {dimension_numbers = #tpu.dot_dimension_numbers<[1], [0], [0], [1], [0, 0, 1, 1], [], []>} : vector<16x16xbf16>, vector<16x20xbf16>, vector<16x20xf32> -> vector<16x20xf32>
    %53 = arith.addf %18, %52 : vector<16x20xf32>
    %c0_25 = arith.constant 0 : index
    %c0_26 = arith.constant 0 : index
    %54 = vector.load %arg8[%c0_25, %c0_26] : memref<6x32xf32, #tpu.memory_space<vmem>>, vector<6x32xf32>
    %cst_27 = arith.constant dense<0.000000e+00> : vector<16x32xf32>
    %55 = tpu.matmul %50, %54, %cst_27 {dimension_numbers = #tpu.dot_dimension_numbers<[1], [0], [0], [1], [0, 0, 1, 1], [], []>} : vector<16x6xf32>, vector<6x32xf32>, vector<16x32xf32> -> vector<16x32xf32>
    %c0_28 = arith.constant 0 : index
    %c0_29 = arith.constant 0 : index
    %56 = vector.load %arg9[%c0_28, %c0_29] : memref<20x32xf32, #tpu.memory_space<vmem>>, vector<20x32xf32>
    %cst_30 = arith.constant dense<0.000000e+00> : vector<16x32xf32>
    %57 = tpu.matmul %53, %56, %cst_30 {dimension_numbers = #tpu.dot_dimension_numbers<[1], [0], [0], [1], [0, 0, 1, 1], [], []>} : vector<16x20xf32>, vector<20x32xf32>, vector<16x32xf32> -> vector<16x32xf32>
    %58 = arith.addf %55, %57 : vector<16x32xf32>
    %c1 = arith.constant 1 : index
    %c0_31 = arith.constant 0 : index
    %c0_32 = arith.constant 0 : index
    %59 = vector.load %arg11[%c1, %c0_31, %c0_32] : memref<19x1x32xf32, #tpu.memory_space<vmem>>, vector<1x1x32xf32>
    %60 = vector.shape_cast %59 : vector<1x1x32xf32> to vector<1x32xf32>
    %61 = vector.broadcast %60 : vector<1x32xf32> to vector<16x32xf32>
    %62 = arith.addf %58, %61 : vector<16x32xf32>
    %cst_33 = arith.constant 0.000000e+00 : f32
    %63 = vector.broadcast %cst_33 : f32 to vector<16x32xf32>
    %64 = arith.maximumf %62, %63 : vector<16x32xf32>
    %c0_34 = arith.constant 0 : index
    %c0_35 = arith.constant 0 : index
    %c0_36 = arith.constant 0 : index
    %65 = vector.load %arg10[%c0_34, %c0_35, %c0_36] : memref<9x32x32xf32, #tpu.memory_space<vmem>>, vector<1x32x32xf32>
    %66 = vector.shape_cast %65 : vector<1x32x32xf32> to vector<32x32xf32>
    %c2 = arith.constant 2 : index
    %c0_37 = arith.constant 0 : index
    %c0_38 = arith.constant 0 : index
    %67 = vector.load %arg11[%c2, %c0_37, %c0_38] : memref<19x1x32xf32, #tpu.memory_space<vmem>>, vector<1x1x32xf32>
    %68 = vector.shape_cast %67 : vector<1x1x32xf32> to vector<1x32xf32>
    %cst_39 = arith.constant dense<0.000000e+00> : vector<16x32xf32>
    %69 = tpu.matmul %64, %66, %cst_39 {dimension_numbers = #tpu.dot_dimension_numbers<[1], [0], [0], [1], [0, 0, 1, 1], [], []>} : vector<16x32xf32>, vector<32x32xf32>, vector<16x32xf32> -> vector<16x32xf32>
    %70 = vector.broadcast %68 : vector<1x32xf32> to vector<16x32xf32>
    %71 = arith.addf %69, %70 : vector<16x32xf32>
    %cst_40 = arith.constant 0.000000e+00 : f32
    %72 = vector.broadcast %cst_40 : f32 to vector<16x32xf32>
    %73 = arith.maximumf %71, %72 : vector<16x32xf32>
    %74 = arith.truncf %73 : vector<16x32xf32> to vector<16x32xbf16>
    %cst_41 = arith.constant dense<0.000000e+00> : vector<16x32xf32>
    %75 = tpu.matmul %47, %74, %cst_41 {dimension_numbers = #tpu.dot_dimension_numbers<[1], [0], [0], [1], [0, 0, 1, 1], [], []>} : vector<16x16xbf16>, vector<16x32xbf16>, vector<16x32xf32> -> vector<16x32xf32>
    %76 = arith.addf %73, %75 : vector<16x32xf32>
    %c1_42 = arith.constant 1 : index
    %c0_43 = arith.constant 0 : index
    %c0_44 = arith.constant 0 : index
    %77 = vector.load %arg10[%c1_42, %c0_43, %c0_44] : memref<9x32x32xf32, #tpu.memory_space<vmem>>, vector<1x32x32xf32>
    %78 = vector.shape_cast %77 : vector<1x32x32xf32> to vector<32x32xf32>
    %c3 = arith.constant 3 : index
    %c0_45 = arith.constant 0 : index
    %c0_46 = arith.constant 0 : index
    %79 = vector.load %arg11[%c3, %c0_45, %c0_46] : memref<19x1x32xf32, #tpu.memory_space<vmem>>, vector<1x1x32xf32>
    %80 = vector.shape_cast %79 : vector<1x1x32xf32> to vector<1x32xf32>
    %cst_47 = arith.constant dense<0.000000e+00> : vector<16x32xf32>
    %81 = tpu.matmul %76, %78, %cst_47 {dimension_numbers = #tpu.dot_dimension_numbers<[1], [0], [0], [1], [0, 0, 1, 1], [], []>} : vector<16x32xf32>, vector<32x32xf32>, vector<16x32xf32> -> vector<16x32xf32>
    %82 = vector.broadcast %80 : vector<1x32xf32> to vector<16x32xf32>
    %83 = arith.addf %81, %82 : vector<16x32xf32>
    %cst_48 = arith.constant 0.000000e+00 : f32
    %84 = vector.broadcast %cst_48 : f32 to vector<16x32xf32>
    %85 = arith.maximumf %83, %84 : vector<16x32xf32>
    %c2_49 = arith.constant 2 : index
    %c0_50 = arith.constant 0 : index
    %c0_51 = arith.constant 0 : index
    %86 = vector.load %arg10[%c2_49, %c0_50, %c0_51] : memref<9x32x32xf32, #tpu.memory_space<vmem>>, vector<1x32x32xf32>
    %87 = vector.shape_cast %86 : vector<1x32x32xf32> to vector<32x32xf32>
    %c4 = arith.constant 4 : index
    %c0_52 = arith.constant 0 : index
    %c0_53 = arith.constant 0 : index
    %88 = vector.load %arg11[%c4, %c0_52, %c0_53] : memref<19x1x32xf32, #tpu.memory_space<vmem>>, vector<1x1x32xf32>
    %89 = vector.shape_cast %88 : vector<1x1x32xf32> to vector<1x32xf32>
    %cst_54 = arith.constant dense<0.000000e+00> : vector<16x32xf32>
    %90 = tpu.matmul %85, %87, %cst_54 {dimension_numbers = #tpu.dot_dimension_numbers<[1], [0], [0], [1], [0, 0, 1, 1], [], []>} : vector<16x32xf32>, vector<32x32xf32>, vector<16x32xf32> -> vector<16x32xf32>
    %91 = vector.broadcast %89 : vector<1x32xf32> to vector<16x32xf32>
    %92 = arith.addf %90, %91 : vector<16x32xf32>
    %cst_55 = arith.constant 0.000000e+00 : f32
    %93 = vector.broadcast %cst_55 : f32 to vector<16x32xf32>
    %94 = arith.maximumf %92, %93 : vector<16x32xf32>
    %c3_56 = arith.constant 3 : index
    %c0_57 = arith.constant 0 : index
    %c0_58 = arith.constant 0 : index
    %95 = vector.load %arg10[%c3_56, %c0_57, %c0_58] : memref<9x32x32xf32, #tpu.memory_space<vmem>>, vector<1x32x32xf32>
    %96 = vector.shape_cast %95 : vector<1x32x32xf32> to vector<32x32xf32>
    %c5 = arith.constant 5 : index
    %c0_59 = arith.constant 0 : index
    %c0_60 = arith.constant 0 : index
    %97 = vector.load %arg11[%c5, %c0_59, %c0_60] : memref<19x1x32xf32, #tpu.memory_space<vmem>>, vector<1x1x32xf32>
    %98 = vector.shape_cast %97 : vector<1x1x32xf32> to vector<1x32xf32>
    %cst_61 = arith.constant dense<0.000000e+00> : vector<16x32xf32>
    %99 = tpu.matmul %94, %96, %cst_61 {dimension_numbers = #tpu.dot_dimension_numbers<[1], [0], [0], [1], [0, 0, 1, 1], [], []>} : vector<16x32xf32>, vector<32x32xf32>, vector<16x32xf32> -> vector<16x32xf32>
    %100 = vector.broadcast %98 : vector<1x32xf32> to vector<16x32xf32>
    %101 = arith.addf %99, %100 : vector<16x32xf32>
    %102 = arith.addf %94, %101 : vector<16x32xf32>
    %c6 = arith.constant 6 : index
    %c0_62 = arith.constant 0 : index
    %c0_63 = arith.constant 0 : index
    %103 = vector.load %arg11[%c6, %c0_62, %c0_63] : memref<19x1x32xf32, #tpu.memory_space<vmem>>, vector<1x1x32xf32>
    %104 = vector.shape_cast %103 : vector<1x1x32xf32> to vector<1x32xf32>
    %c7 = arith.constant 7 : index
    %c0_64 = arith.constant 0 : index
    %c0_65 = arith.constant 0 : index
    %105 = vector.load %arg11[%c7, %c0_64, %c0_65] : memref<19x1x32xf32, #tpu.memory_space<vmem>>, vector<1x1x32xf32>
    %106 = vector.shape_cast %105 : vector<1x1x32xf32> to vector<1x32xf32>
    %cst_66 = arith.constant dense<0.000000e+00> : vector<16xf32>
    %107 = vector.multi_reduction <add>, %102, %cst_66 [1] : vector<16x32xf32> to vector<16xf32>
    %108 = vector.shape_cast %107 : vector<16xf32> to vector<16x1xf32>
    %cst_67 = arith.constant 3.200000e+01 : f32
    %109 = vector.broadcast %cst_67 : f32 to vector<16x1xf32>
    %110 = arith.divf %108, %109 : vector<16x1xf32>
    %111 = vector.broadcast %110 : vector<16x1xf32> to vector<16x32xf32>
    %112 = arith.subf %102, %111 : vector<16x32xf32>
    %113 = vector.broadcast %110 : vector<16x1xf32> to vector<16x32xf32>
    %114 = arith.subf %102, %113 : vector<16x32xf32>
    %115 = arith.mulf %112, %114 : vector<16x32xf32>
    %cst_68 = arith.constant dense<0.000000e+00> : vector<16xf32>
    %116 = vector.multi_reduction <add>, %115, %cst_68 [1] : vector<16x32xf32> to vector<16xf32>
    %117 = vector.shape_cast %116 : vector<16xf32> to vector<16x1xf32>
    %cst_69 = arith.constant 3.200000e+01 : f32
    %118 = vector.broadcast %cst_69 : f32 to vector<16x1xf32>
    %119 = arith.divf %117, %118 : vector<16x1xf32>
    %120 = vector.broadcast %110 : vector<16x1xf32> to vector<16x32xf32>
    %121 = arith.subf %102, %120 : vector<16x32xf32>
    %cst_70 = arith.constant 9.99999974E-6 : f32
    %122 = vector.broadcast %cst_70 : f32 to vector<16x1xf32>
    %123 = arith.addf %119, %122 : vector<16x1xf32>
    %124 = math.rsqrt %123 : vector<16x1xf32>
    %125 = vector.broadcast %124 : vector<16x1xf32> to vector<16x32xf32>
    %126 = arith.mulf %121, %125 : vector<16x32xf32>
    %127 = vector.broadcast %104 : vector<1x32xf32> to vector<16x32xf32>
    %128 = arith.mulf %126, %127 : vector<16x32xf32>
    %129 = vector.broadcast %106 : vector<1x32xf32> to vector<16x32xf32>
    %130 = arith.addf %128, %129 : vector<16x32xf32>
    %c4_71 = arith.constant 4 : index
    %c0_72 = arith.constant 0 : index
    %c0_73 = arith.constant 0 : index
    %131 = vector.load %arg10[%c4_71, %c0_72, %c0_73] : memref<9x32x32xf32, #tpu.memory_space<vmem>>, vector<1x32x32xf32>
    %132 = vector.shape_cast %131 : vector<1x32x32xf32> to vector<32x32xf32>
    %c8 = arith.constant 8 : index
    %c0_74 = arith.constant 0 : index
    %c0_75 = arith.constant 0 : index
    %133 = vector.load %arg11[%c8, %c0_74, %c0_75] : memref<19x1x32xf32, #tpu.memory_space<vmem>>, vector<1x1x32xf32>
    %134 = vector.shape_cast %133 : vector<1x1x32xf32> to vector<1x32xf32>
    %cst_76 = arith.constant dense<0.000000e+00> : vector<16x32xf32>
    %135 = tpu.matmul %130, %132, %cst_76 {dimension_numbers = #tpu.dot_dimension_numbers<[1], [0], [0], [1], [0, 0, 1, 1], [], []>} : vector<16x32xf32>, vector<32x32xf32>, vector<16x32xf32> -> vector<16x32xf32>
    %136 = vector.broadcast %134 : vector<1x32xf32> to vector<16x32xf32>
    %137 = arith.addf %135, %136 : vector<16x32xf32>
    %cst_77 = arith.constant 0.000000e+00 : f32
    %138 = vector.broadcast %cst_77 : f32 to vector<16x32xf32>
    %139 = arith.maximumf %137, %138 : vector<16x32xf32>
    %c5_78 = arith.constant 5 : index
    %c0_79 = arith.constant 0 : index
    %c0_80 = arith.constant 0 : index
    %140 = vector.load %arg10[%c5_78, %c0_79, %c0_80] : memref<9x32x32xf32, #tpu.memory_space<vmem>>, vector<1x32x32xf32>
    %141 = vector.shape_cast %140 : vector<1x32x32xf32> to vector<32x32xf32>
    %c9 = arith.constant 9 : index
    %c0_81 = arith.constant 0 : index
    %c0_82 = arith.constant 0 : index
    %142 = vector.load %arg11[%c9, %c0_81, %c0_82] : memref<19x1x32xf32, #tpu.memory_space<vmem>>, vector<1x1x32xf32>
    %143 = vector.shape_cast %142 : vector<1x1x32xf32> to vector<1x32xf32>
    %cst_83 = arith.constant dense<0.000000e+00> : vector<16x32xf32>
    %144 = tpu.matmul %139, %141, %cst_83 {dimension_numbers = #tpu.dot_dimension_numbers<[1], [0], [0], [1], [0, 0, 1, 1], [], []>} : vector<16x32xf32>, vector<32x32xf32>, vector<16x32xf32> -> vector<16x32xf32>
    %145 = vector.broadcast %143 : vector<1x32xf32> to vector<16x32xf32>
    %146 = arith.addf %144, %145 : vector<16x32xf32>
    %147 = arith.addf %130, %146 : vector<16x32xf32>
    %c10 = arith.constant 10 : index
    %c0_84 = arith.constant 0 : index
    %c0_85 = arith.constant 0 : index
    %148 = vector.load %arg11[%c10, %c0_84, %c0_85] : memref<19x1x32xf32, #tpu.memory_space<vmem>>, vector<1x1x32xf32>
    %149 = vector.shape_cast %148 : vector<1x1x32xf32> to vector<1x32xf32>
    %c11 = arith.constant 11 : index
    %c0_86 = arith.constant 0 : index
    %c0_87 = arith.constant 0 : index
    %150 = vector.load %arg11[%c11, %c0_86, %c0_87] : memref<19x1x32xf32, #tpu.memory_space<vmem>>, vector<1x1x32xf32>
    %151 = vector.shape_cast %150 : vector<1x1x32xf32> to vector<1x32xf32>
    %cst_88 = arith.constant dense<0.000000e+00> : vector<16xf32>
    %152 = vector.multi_reduction <add>, %147, %cst_88 [1] : vector<16x32xf32> to vector<16xf32>
    %153 = vector.shape_cast %152 : vector<16xf32> to vector<16x1xf32>
    %cst_89 = arith.constant 3.200000e+01 : f32
    %154 = vector.broadcast %cst_89 : f32 to vector<16x1xf32>
    %155 = arith.divf %153, %154 : vector<16x1xf32>
    %156 = vector.broadcast %155 : vector<16x1xf32> to vector<16x32xf32>
    %157 = arith.subf %147, %156 : vector<16x32xf32>
    %158 = vector.broadcast %155 : vector<16x1xf32> to vector<16x32xf32>
    %159 = arith.subf %147, %158 : vector<16x32xf32>
    %160 = arith.mulf %157, %159 : vector<16x32xf32>
    %cst_90 = arith.constant dense<0.000000e+00> : vector<16xf32>
    %161 = vector.multi_reduction <add>, %160, %cst_90 [1] : vector<16x32xf32> to vector<16xf32>
    %162 = vector.shape_cast %161 : vector<16xf32> to vector<16x1xf32>
    %cst_91 = arith.constant 3.200000e+01 : f32
    %163 = vector.broadcast %cst_91 : f32 to vector<16x1xf32>
    %164 = arith.divf %162, %163 : vector<16x1xf32>
    %165 = vector.broadcast %155 : vector<16x1xf32> to vector<16x32xf32>
    %166 = arith.subf %147, %165 : vector<16x32xf32>
    %cst_92 = arith.constant 9.99999974E-6 : f32
    %167 = vector.broadcast %cst_92 : f32 to vector<16x1xf32>
    %168 = arith.addf %164, %167 : vector<16x1xf32>
    %169 = math.rsqrt %168 : vector<16x1xf32>
    %170 = vector.broadcast %169 : vector<16x1xf32> to vector<16x32xf32>
    %171 = arith.mulf %166, %170 : vector<16x32xf32>
    %172 = vector.broadcast %149 : vector<1x32xf32> to vector<16x32xf32>
    %173 = arith.mulf %171, %172 : vector<16x32xf32>
    %174 = vector.broadcast %151 : vector<1x32xf32> to vector<16x32xf32>
    %175 = arith.addf %173, %174 : vector<16x32xf32>
    %c6_93 = arith.constant 6 : index
    %c0_94 = arith.constant 0 : index
    %c0_95 = arith.constant 0 : index
    %176 = vector.load %arg10[%c6_93, %c0_94, %c0_95] : memref<9x32x32xf32, #tpu.memory_space<vmem>>, vector<1x32x32xf32>
    %177 = vector.shape_cast %176 : vector<1x32x32xf32> to vector<32x32xf32>
    %c12 = arith.constant 12 : index
    %c0_96 = arith.constant 0 : index
    %c0_97 = arith.constant 0 : index
    %178 = vector.load %arg11[%c12, %c0_96, %c0_97] : memref<19x1x32xf32, #tpu.memory_space<vmem>>, vector<1x1x32xf32>
    %179 = vector.shape_cast %178 : vector<1x1x32xf32> to vector<1x32xf32>
    %cst_98 = arith.constant dense<0.000000e+00> : vector<16x32xf32>
    %180 = tpu.matmul %175, %177, %cst_98 {dimension_numbers = #tpu.dot_dimension_numbers<[1], [0], [0], [1], [0, 0, 1, 1], [], []>} : vector<16x32xf32>, vector<32x32xf32>, vector<16x32xf32> -> vector<16x32xf32>
    %181 = vector.broadcast %179 : vector<1x32xf32> to vector<16x32xf32>
    %182 = arith.addf %180, %181 : vector<16x32xf32>
    %183 = arith.addf %175, %182 : vector<16x32xf32>
    %c13 = arith.constant 13 : index
    %c0_99 = arith.constant 0 : index
    %c0_100 = arith.constant 0 : index
    %184 = vector.load %arg11[%c13, %c0_99, %c0_100] : memref<19x1x32xf32, #tpu.memory_space<vmem>>, vector<1x1x32xf32>
    %185 = vector.shape_cast %184 : vector<1x1x32xf32> to vector<1x32xf32>
    %c14 = arith.constant 14 : index
    %c0_101 = arith.constant 0 : index
    %c0_102 = arith.constant 0 : index
    %186 = vector.load %arg11[%c14, %c0_101, %c0_102] : memref<19x1x32xf32, #tpu.memory_space<vmem>>, vector<1x1x32xf32>
    %187 = vector.shape_cast %186 : vector<1x1x32xf32> to vector<1x32xf32>
    %cst_103 = arith.constant dense<0.000000e+00> : vector<16xf32>
    %188 = vector.multi_reduction <add>, %183, %cst_103 [1] : vector<16x32xf32> to vector<16xf32>
    %189 = vector.shape_cast %188 : vector<16xf32> to vector<16x1xf32>
    %cst_104 = arith.constant 3.200000e+01 : f32
    %190 = vector.broadcast %cst_104 : f32 to vector<16x1xf32>
    %191 = arith.divf %189, %190 : vector<16x1xf32>
    %192 = vector.broadcast %191 : vector<16x1xf32> to vector<16x32xf32>
    %193 = arith.subf %183, %192 : vector<16x32xf32>
    %194 = vector.broadcast %191 : vector<16x1xf32> to vector<16x32xf32>
    %195 = arith.subf %183, %194 : vector<16x32xf32>
    %196 = arith.mulf %193, %195 : vector<16x32xf32>
    %cst_105 = arith.constant dense<0.000000e+00> : vector<16xf32>
    %197 = vector.multi_reduction <add>, %196, %cst_105 [1] : vector<16x32xf32> to vector<16xf32>
    %198 = vector.shape_cast %197 : vector<16xf32> to vector<16x1xf32>
    %cst_106 = arith.constant 3.200000e+01 : f32
    %199 = vector.broadcast %cst_106 : f32 to vector<16x1xf32>
    %200 = arith.divf %198, %199 : vector<16x1xf32>
    %201 = vector.broadcast %191 : vector<16x1xf32> to vector<16x32xf32>
    %202 = arith.subf %183, %201 : vector<16x32xf32>
    %cst_107 = arith.constant 9.99999974E-6 : f32
    %203 = vector.broadcast %cst_107 : f32 to vector<16x1xf32>
    %204 = arith.addf %200, %203 : vector<16x1xf32>
    %205 = math.rsqrt %204 : vector<16x1xf32>
    %206 = vector.broadcast %205 : vector<16x1xf32> to vector<16x32xf32>
    %207 = arith.mulf %202, %206 : vector<16x32xf32>
    %208 = vector.broadcast %185 : vector<1x32xf32> to vector<16x32xf32>
    %209 = arith.mulf %207, %208 : vector<16x32xf32>
    %210 = vector.broadcast %187 : vector<1x32xf32> to vector<16x32xf32>
    %211 = arith.addf %209, %210 : vector<16x32xf32>
    %c7_108 = arith.constant 7 : index
    %c0_109 = arith.constant 0 : index
    %c0_110 = arith.constant 0 : index
    %212 = vector.load %arg10[%c7_108, %c0_109, %c0_110] : memref<9x32x32xf32, #tpu.memory_space<vmem>>, vector<1x32x32xf32>
    %213 = vector.shape_cast %212 : vector<1x32x32xf32> to vector<32x32xf32>
    %c15 = arith.constant 15 : index
    %c0_111 = arith.constant 0 : index
    %c0_112 = arith.constant 0 : index
    %214 = vector.load %arg11[%c15, %c0_111, %c0_112] : memref<19x1x32xf32, #tpu.memory_space<vmem>>, vector<1x1x32xf32>
    %215 = vector.shape_cast %214 : vector<1x1x32xf32> to vector<1x32xf32>
    %cst_113 = arith.constant dense<0.000000e+00> : vector<16x32xf32>
    %216 = tpu.matmul %211, %213, %cst_113 {dimension_numbers = #tpu.dot_dimension_numbers<[1], [0], [0], [1], [0, 0, 1, 1], [], []>} : vector<16x32xf32>, vector<32x32xf32>, vector<16x32xf32> -> vector<16x32xf32>
    %217 = vector.broadcast %215 : vector<1x32xf32> to vector<16x32xf32>
    %218 = arith.addf %216, %217 : vector<16x32xf32>
    %cst_114 = arith.constant 0.000000e+00 : f32
    %219 = vector.broadcast %cst_114 : f32 to vector<16x32xf32>
    %220 = arith.maximumf %218, %219 : vector<16x32xf32>
    %c8_115 = arith.constant 8 : index
    %c0_116 = arith.constant 0 : index
    %c0_117 = arith.constant 0 : index
    %221 = vector.load %arg10[%c8_115, %c0_116, %c0_117] : memref<9x32x32xf32, #tpu.memory_space<vmem>>, vector<1x32x32xf32>
    %222 = vector.shape_cast %221 : vector<1x32x32xf32> to vector<32x32xf32>
    %c16 = arith.constant 16 : index
    %c0_118 = arith.constant 0 : index
    %c0_119 = arith.constant 0 : index
    %223 = vector.load %arg11[%c16, %c0_118, %c0_119] : memref<19x1x32xf32, #tpu.memory_space<vmem>>, vector<1x1x32xf32>
    %224 = vector.shape_cast %223 : vector<1x1x32xf32> to vector<1x32xf32>
    %cst_120 = arith.constant dense<0.000000e+00> : vector<16x32xf32>
    %225 = tpu.matmul %220, %222, %cst_120 {dimension_numbers = #tpu.dot_dimension_numbers<[1], [0], [0], [1], [0, 0, 1, 1], [], []>} : vector<16x32xf32>, vector<32x32xf32>, vector<16x32xf32> -> vector<16x32xf32>
    %226 = vector.broadcast %224 : vector<1x32xf32> to vector<16x32xf32>
    %227 = arith.addf %225, %226 : vector<16x32xf32>
    %228 = arith.addf %211, %227 : vector<16x32xf32>
    %c17 = arith.constant 17 : index
    %c0_121 = arith.constant 0 : index
    %c0_122 = arith.constant 0 : index
    %229 = vector.load %arg11[%c17, %c0_121, %c0_122] : memref<19x1x32xf32, #tpu.memory_space<vmem>>, vector<1x1x32xf32>
    %230 = vector.shape_cast %229 : vector<1x1x32xf32> to vector<1x32xf32>
    %c18 = arith.constant 18 : index
    %c0_123 = arith.constant 0 : index
    %c0_124 = arith.constant 0 : index
    %231 = vector.load %arg11[%c18, %c0_123, %c0_124] : memref<19x1x32xf32, #tpu.memory_space<vmem>>, vector<1x1x32xf32>
    %232 = vector.shape_cast %231 : vector<1x1x32xf32> to vector<1x32xf32>
    %cst_125 = arith.constant dense<0.000000e+00> : vector<16xf32>
    %233 = vector.multi_reduction <add>, %228, %cst_125 [1] : vector<16x32xf32> to vector<16xf32>
    %234 = vector.shape_cast %233 : vector<16xf32> to vector<16x1xf32>
    %cst_126 = arith.constant 3.200000e+01 : f32
    %235 = vector.broadcast %cst_126 : f32 to vector<16x1xf32>
    %236 = arith.divf %234, %235 : vector<16x1xf32>
    %237 = vector.broadcast %236 : vector<16x1xf32> to vector<16x32xf32>
    %238 = arith.subf %228, %237 : vector<16x32xf32>
    %239 = vector.broadcast %236 : vector<16x1xf32> to vector<16x32xf32>
    %240 = arith.subf %228, %239 : vector<16x32xf32>
    %241 = arith.mulf %238, %240 : vector<16x32xf32>
    %cst_127 = arith.constant dense<0.000000e+00> : vector<16xf32>
    %242 = vector.multi_reduction <add>, %241, %cst_127 [1] : vector<16x32xf32> to vector<16xf32>
    %243 = vector.shape_cast %242 : vector<16xf32> to vector<16x1xf32>
    %cst_128 = arith.constant 3.200000e+01 : f32
    %244 = vector.broadcast %cst_128 : f32 to vector<16x1xf32>
    %245 = arith.divf %243, %244 : vector<16x1xf32>
    %246 = vector.broadcast %236 : vector<16x1xf32> to vector<16x32xf32>
    %247 = arith.subf %228, %246 : vector<16x32xf32>
    %cst_129 = arith.constant 9.99999974E-6 : f32
    %248 = vector.broadcast %cst_129 : f32 to vector<16x1xf32>
    %249 = arith.addf %245, %248 : vector<16x1xf32>
    %250 = math.rsqrt %249 : vector<16x1xf32>
    %251 = vector.broadcast %250 : vector<16x1xf32> to vector<16x32xf32>
    %252 = arith.mulf %247, %251 : vector<16x32xf32>
    %253 = vector.broadcast %230 : vector<1x32xf32> to vector<16x32xf32>
    %254 = arith.mulf %252, %253 : vector<16x32xf32>
    %255 = vector.broadcast %232 : vector<1x32xf32> to vector<16x32xf32>
    %256 = arith.addf %254, %255 : vector<16x32xf32>
    %c0_130 = arith.constant 0 : index
    %c0_131 = arith.constant 0 : index
    %257 = vector.load %arg12[%c0_130, %c0_131] : memref<32x128xf32, #tpu.memory_space<vmem>>, vector<32x128xf32>
    %c0_132 = arith.constant 0 : index
    %c0_133 = arith.constant 0 : index
    %258 = vector.load %arg13[%c0_132, %c0_133] : memref<1x128xf32, #tpu.memory_space<vmem>>, vector<1x128xf32>
    %cst_134 = arith.constant dense<0.000000e+00> : vector<16x128xf32>
    %259 = tpu.matmul %256, %257, %cst_134 {dimension_numbers = #tpu.dot_dimension_numbers<[1], [0], [0], [1], [0, 0, 1, 1], [], []>} : vector<16x32xf32>, vector<32x128xf32>, vector<16x128xf32> -> vector<16x128xf32>
    %260 = vector.broadcast %258 : vector<1x128xf32> to vector<16x128xf32>
    %261 = arith.addf %259, %260 : vector<16x128xf32>
    %c0_135 = arith.constant 0 : index
    %c0_136 = arith.constant 0 : index
    %262 = vector.load %arg14[%c0_135, %c0_136] : memref<16x128xf32, #tpu.memory_space<vmem>>, vector<16x128xf32>
    tpu.vector_store %arg14[%c0_135, %c0_136], %261 {strides = array<i32>} : memref<16x128xf32, #tpu.memory_space<vmem>>, vector<16x128xf32>,
    return
  }
  func.func @transform_0(%arg0: i32) -> (i32, i32) {
    %c0_i32 = arith.constant 0 : i32
    %c0_i32_0 = arith.constant 0 : i32
    return %arg0, %c0_i32 : i32, i32
  }
  func.func @transform_1(%arg0: i32) -> (i32, i32) {
    %c0_i32 = arith.constant 0 : i32
    %c0_i32_0 = arith.constant 0 : i32
    return %arg0, %c0_i32 : i32, i32
  }
  func.func @transform_2(%arg0: i32) -> (i32, i32, i32) {
    %c0_i32 = arith.constant 0 : i32
    %c0_i32_0 = arith.constant 0 : i32
    %c0_i32_1 = arith.constant 0 : i32
    return %arg0, %c0_i32, %c0_i32_0 : i32, i32, i32
  }
  func.func @transform_3(%arg0: i32) -> (i32, i32) {
    %c0_i32 = arith.constant 0 : i32
    %c0_i32_0 = arith.constant 0 : i32
    return %arg0, %c0_i32 : i32, i32
  }
  func.func @transform_4(%arg0: i32) -> (i32, i32) {
    %c0_i32 = arith.constant 0 : i32
    %c0_i32_0 = arith.constant 0 : i32
    %c0_i32_1 = arith.constant 0 : i32
    return %c0_i32, %c0_i32_0 : i32, i32
  }
  func.func @transform_5(%arg0: i32) -> (i32, i32) {
    %c0_i32 = arith.constant 0 : i32
    %c0_i32_0 = arith.constant 0 : i32
    %c0_i32_1 = arith.constant 0 : i32
    return %c0_i32, %c0_i32_0 : i32, i32
  }
  func.func @transform_6(%arg0: i32) -> (i32, i32) {
    %c0_i32 = arith.constant 0 : i32
    %c0_i32_0 = arith.constant 0 : i32
    %c0_i32_1 = arith.constant 0 : i32
    return %c0_i32, %c0_i32_0 : i32, i32
  }
  func.func @transform_7(%arg0: i32) -> (i32, i32) {
    %c0_i32 = arith.constant 0 : i32
    %c0_i32_0 = arith.constant 0 : i32
    %c0_i32_1 = arith.constant 0 : i32
    return %c0_i32, %c0_i32_0 : i32, i32
  }
  func.func @transform_8(%arg0: i32) -> (i32, i32) {
    %c0_i32 = arith.constant 0 : i32
    %c0_i32_0 = arith.constant 0 : i32
    %c0_i32_1 = arith.constant 0 : i32
    return %c0_i32, %c0_i32_0 : i32, i32
  }
  func.func @transform_9(%arg0: i32) -> (i32, i32, i32) {
    %c0_i32 = arith.constant 0 : i32
    %c0_i32_0 = arith.constant 0 : i32
    %c0_i32_1 = arith.constant 0 : i32
    %c0_i32_2 = arith.constant 0 : i32
    return %c0_i32, %c0_i32_0, %c0_i32_1 : i32, i32, i32
  }
  func.func @transform_10(%arg0: i32) -> (i32, i32, i32) {
    %c0_i32 = arith.constant 0 : i32
    %c0_i32_0 = arith.constant 0 : i32
    %c0_i32_1 = arith.constant 0 : i32
    %c0_i32_2 = arith.constant 0 : i32
    return %c0_i32, %c0_i32_0, %c0_i32_1 : i32, i32, i32
  }
  func.func @transform_11(%arg0: i32) -> (i32, i32) {
    %c0_i32 = arith.constant 0 : i32
    %c0_i32_0 = arith.constant 0 : i32
    %c0_i32_1 = arith.constant 0 : i32
    return %c0_i32, %c0_i32_0 : i32, i32
  }
  func.func @transform_12(%arg0: i32) -> (i32, i32) {
    %c0_i32 = arith.constant 0 : i32
    %c0_i32_0 = arith.constant 0 : i32
    %c0_i32_1 = arith.constant 0 : i32
    return %c0_i32, %c0_i32_0 : i32, i32
  }
  func.func @transform_13(%arg0: i32) -> (i32, i32) {
    %c0_i32 = arith.constant 0 : i32
    %c0_i32_0 = arith.constant 0 : i32
    return %arg0, %c0_i32 : i32, i32
  }
}

</mosaic_0001>

<bundles_post_ra>
// kernel: gin_policy_forward.1
= control target key start
LH: loop header
LB: loop body
LE: loop exit
PB: predicated region body
PF: predicated region fallthrough
CT: control target
= control target key end

     0   :  { %18 = vsyncpa [#allocation3], 0  ;;  %s2264_s25 = smov [#allocation2]   ;;  %s2567_s0 = inlined_call_operand.vmem [shape: f32[16,6], index: 0, kind: input, shape index: {}]   ;;  %s2568_s1 = inlined_call_operand.vmem [shape: f32[16,20], index: 1, kind: input, shape index: {}]   ;;  %s2569_s2 = inlined_call_operand.vmem [shape: f32[1,8,16], index: 2, kind: input, shape index: {}]   ;;  %s2570_s3 = inlined_call_operand.vmem [shape: f32[16,1], index: 3, kind: input, shape index: {}]   ;;  %s2571_s4 = inlined_call_operand.vmem [shape: f32[20,32], index: 4, kind: input, shape index: {}]   ;;  %s2572_s5 = inlined_call_operand.vmem [shape: f32[32,20], index: 5, kind: input, shape index: {}]   ;;  %s2573_s6 = inlined_call_operand.vmem [shape: f32[1,20], index: 6, kind: input, shape index: {}]   ;;  %s2574_s7 = inlined_call_operand.vmem [shape: f32[6,32], index: 7, kind: input, shape index: {}]   ;;  %s2575_s8 = inlined_call_operand.vmem [shape: f32[20,32], index: 8, kind: input, shape index: {}]   ;;  %s2576_s9 = inlined_call_operand.hbm [shape: f32[9,32,32], index: 9, kind: input, shape index: {}]   ;;  %s2577_s10 = inlined_call_operand.vmem [shape: f32[19,1,32], index: 10, kind: input, shape index: {}]   ;;  %s2578_s11 = inlined_call_operand.vmem [shape: f32[32,128], index: 11, kind: input, shape index: {}]   ;;  %s2579_s12 = inlined_call_operand.vmem [shape: f32[1,128], index: 12, kind: input, shape index: {}]   ;;  %s2580_s13 = inlined_call_operand.vmem [shape: f32[16,128], index: 13, kind: output, shape index: {}]  }
   0x1   :  { %s42_s26 = sshll.u32 %s2264_s25, 4  ;;  %s2240_s29 = scalar_lea.hbm %s2576_s9, 4608  ;;  %s43_s26 = int_to_ptr.vmem [resolvable:$true] %s42_s26 }
   0x2   :  { %p2241_p0 = scmp.ne.s32.totalorder %s2576_s9, %s2240_s29  ;;  %p2244_p1 = scmp.lt.u32.totalorder %s2240_s29, %s2576_s9 }
   0x4   :  { %p2246_p2 = pnand %p2244_p1, %p2241_p0 }
   0x6   :  { %2249 = shalt.err (!%p2246_p2)
}
   0x7   :  { %s2250_s17 = scalar_lea.vmem %s43_s26, 4608  ;;  %p2255_p4 = scmp.lt.s32.totalorder %s43_s26, %s43_s26 }
   0x8   :  { %p2251_p3 = scmp.ne.s32.totalorder %s43_s26, %s2250_s17  ;;  %p2256_p5 = scmp.lt.s32.totalorder %s2250_s17, %s2250_s17 }
   0xa   :  { %p2257_p6 = por %p2256_p5, %p2255_p4 }
   0xc   :  { %p2258_p7 = pnand %p2257_p6, %p2251_p3 }
   0xe   :  { %2261 = shalt.err (!%p2258_p7)
}
   0xf   :  { %s2265_s18 = smov 128   ;;  %s2266_s19 = smov 8  }
  0x10   :  { %48 = dma.hbm_to_vmem [thread:$0]  %s2576_s9, 4608, %s43_s26, [#allocation3], %s2265_s18, %s2265_s18, %s2266_s19  }
  0x11   :  { %2262 = dma.done.wait [#allocation3], 4608  }
  0x12   :  { %2263 = vsyncadd [#allocation3], 4294962688  ;;  %vm74_vm0 = vcmask 162816   ;;  %v64_v0 = vld [vmem:[%s2571_s4] sm:$0xff]  ;;  %v65_v1 = vld [vmem:[%s2571_s4 + $0x8] sm:$0xff]  ;;  %vm81_vm1 = vcmask 1043456   ;;  %v267_v20 = vlaneseq }
  0x13   :  { %v2116_v2 = vpack.c.bf16 %v65_v1, %v64_v0  ;;  %v61_v3 = vld [vmem:[%s2568_s1] sm:$0xff]  ;;  %v66_v5 = vld [vmem:[%s2571_s4 + $0x10] sm:$0xf]  ;;  %v163_v6 = vld [vmem:[%s2572_s5 + $0x8] sm:$0xff]  ;;  %v2267_v13 = vmov 1   ;;  %v2268_v14 = vmov 0  }
  0x14   :  { %v162_v4 = vld [vmem:[%s2572_s5] sm:$0xff]  ;;  %1960 = vmatprep.mubr.msk.f32.mxu0 %vm74_vm0, %v61_v3  ;;  %v62_v8 = vld [vmem:[%s2568_s1 + $0x8] sm:$0xff]  ;;  %v164_v9 = vld [vmem:[%s2572_s5 + $0x10] sm:$0xff]  ;;  %2222 = vset.pattern.permute.xlu1 %v2267_v13  ;;  %v2269_v18 = vmov 0.0   ;;  %vm2270_vm2 = vmmov 0   ;;  %v268_v21 = vshrl.u32 %v267_v20, 7 }
  0x15   :  { %2117 = vmatprep.subr.bf16.mxu0 %v2116_v2  ;;  %v2120_v7 = vpack.c.bf16 %v163_v6, %v162_v4  ;;  %v165_v10 = vld [vmem:[%s2572_s5 + $0x18] sm:$0xff]  ;;  %v2387_v12 = vld [vmem:[%s2567_s0] sm:$0xff]  ;;  %2221 = vset.pattern.permute.xlu0 %v2268_v14  ;;  %v2394_v15 = vld [vmem:[%s2567_s0 + $0x8] sm:$0xff]  ;;  %vm173_vm3 = vcmask 261120   ;;  %v315_v43 = vand.u32 127, %v267_v20  ;;  %vm328_vm14 = vcmask 130048  }
  0x16   :  { %2119 = vmatpush3.bf16.msra.mxu0 %v2116_v2  ;;  %v2124_v11 = vpack.c.bf16 %v165_v10, %v164_v9  ;;  %274 = vperm.xlu1 %2222, %v2387_v12   ;;  %v293_v16 = vld [vmem:[%s2570_s3] sm:$0xff]  ;;  %v294_v17 = vld [vmem:[%s2570_s3 + $0x8] sm:$0xff]  ;;  %v327_v19 = vpack.c.bf16 %v2394_v15, %v2387_v12  ;;  %v283_v26 = vsub.s32 1, %v268_v21  ;;  %v269_v27 = vsub.s32 0, %v268_v21 }
  0x17   :  { %1958 = vmatprep.subr.msk.mxu0 %vm81_vm1, %v66_v5  ;;  %2121 = vmatprep.subr.bf16.mxu1 %v2120_v7  ;;  %v1796_v22 = vld [vmem:[%s2577_s10] ss:$0 sm:$0xff]  ;;  %v307_v38 = vsub.s32 2, %v268_v21  ;;  %v313_v48 = vadd.s32 8, %v268_v21  ;;  %vm320_vm5 = vcmp.ne.s32.totalorder %v268_v21, %v315_v43  ;;  %v421_v58 = vld [vmem:[%s2575_s8 + $0x8] sm:$0xff]  ;;  %vm514_vm15 = vcmask 1045504  }
  0x18   :  { %2123 = vmatpush3.bf16.msra.mxu1 %v2120_v7  ;;  %259 = vperm.xlu0 %2221, %v2387_v12   ;;  %v63_v29 = vld [vmem:[%s2569_s2] sm:$0xff] }
  0x19   :  { %2125 = vmatprep.subr.bf16.mxu1 %v2124_v11  ;;  %v284_v32 = vrot.slane %v63_v29, %v283_v26  ;;  %v270_v33 = vrot.slane %v63_v29, %v269_v27  ;;  %v308_v46 = vrot.slane %v63_v29, %v307_v38  ;;  %vm321_vm7 = vcmp.ne.s32.totalorder %v313_v48, %v315_v43  ;;  %v420_v57 = vld [vmem:[%s2575_s8] sm:$0xff]  ;;  %v748_v43 = vld [vmem:[#allocation2 + $0x38] sm:$0xff] }
  0x1a   :  { %1959 = vmatpush3.msk.msra.mxu0 %vm81_vm1, %v66_v5  ;;  %278 = vperm.xlu1 %2222, %v2394_v15   ;;  %v2128_v59 = vpack.c.bf16 %v421_v58, %v420_v57  ;;  %v1800_v60 = vld [vmem:[%s2573_s6] ss:$0 sm:$0xff]  ;;  %v1812_v27 = vld [vmem:[%s2577_s10 + $0x1] ss:$0 sm:$0xff]  ;;  %v938_v58 = vld [vmem:[#allocation2 + $0x68] sm:$0xff] }
  0x1b   :  { %1961 = vmatmul.mubr.msk.f32.vlgmr.msra.gmra.mrb[0].mxu0 %vm74_vm0, %v62_v8  ;;  %1974 = vmatprep.subr.bf16.mxu0 %v2269_v18  ;;  %v422_v8 = vld [vmem:[%s2575_s8 + $0x10] sm:$0xf]  ;;  %v419_v9 = vld [vmem:[%s2574_s7] sm:$0x3f] }
  0x1c   :  { %2127 = vmatpush3.bf16.msra.mxu1 %v2124_v11  ;;  %264 = vperm.xlu0 %2221, %v2394_v15   ;;  %v605_v10 = vld [vmem:[#allocation2] sm:$0xff]  ;;  %v606_v11 = vld [vmem:[#allocation2 + $0x8] sm:$0xff] }
  0x1d   :  { %1980 = vmatprep.subr.bf16.mxu1 %v2269_v18  ;;  %1976 = vmatprep.mubr.msk.bf16.mxu0 %vm2270_vm2, %v2269_v18  ;;  %v2132_v13 = vpack.c.bf16 %v606_v11, %v605_v10  ;;  %v937_v57 = vld [vmem:[#allocation2 + $0x60] sm:$0xff] }
  0x1e   :  { %2223 = vset.pattern.permute.xlu1 %v2268_v14  ;;  %1975 = vmatpush3.bf16.msra.mxu0 %v327_v19 }
  0x1f   :  { %302 = vperm.xlu1 %2223, %v294_v17   ;;  %2129 = vmatprep.subr.bf16.mxu0 %v2128_v59 }
  0x20   :  { %297 = vperm.xlu0 %2221, %v293_v16  }
  0x95   :  { %v275_v34 = vpop.permute.xlu1 %274 }
  0x96   :  { %v285_v36 = vsub.f32 %v275_v34, %v284_v32 }
  0x97   :  { %v260_v35 = vpop.permute.xlu0 %259 }
  0x98   :  { %v271_v37 = vsub.f32 %v260_v35, %v270_v33  ;;  %v289_v39 = vmul.f32 %v285_v36, %v285_v36  ;;  %v1814_v35 = vld [vmem:[%s2577_s10 + $0x2] ss:$0 sm:$0xff] }
  0x99   :  { %v279_v41 = vpop.permute.xlu1 %278 }
  0x9a   :  { %v287_v40 = vmul.f32 %v271_v37, %v271_v37  ;;  %v286_v44 = vsub.f32 %v279_v41, %v284_v32 }
  0x9b   :  { %v265_v42 = vpop.permute.xlu0 %264 }
  0x9c   :  { %v272_v45 = vsub.f32 %v265_v42, %v270_v33  ;;  %v291_v47 = vadd.f32 %v289_v39, %v287_v40  ;;  %v290_v49 = vmul.f32 %v286_v44, %v286_v44  ;;  %v746_v33 = vld [vmem:[#allocation2 + $0x28] sm:$0xff] }
  0x9e   :  { %v288_v50 = vmul.f32 %v272_v45, %v272_v45  ;;  %vm316_vm4 = vcmp.le.f32.partialorder %v291_v47, 100.0  ;;  %v303_v52 = vpop.permute.xlu1 %302  ;;  %v841_v45 = vld [vmem:[#allocation2 + $0x40] sm:$0xff] }
  0x9f   :  { %v298_v51 = vpop.permute.xlu0 %297  ;;  %vm310_vm8 = vcmp.eq.f32.partialorder %v303_v52, %v308_v46 }
  0xa0   :  { %v292_v53 = vadd.f32 %v290_v49, %v288_v50  ;;  %vm309_vm6 = vcmp.eq.f32.partialorder %v298_v51, %v308_v46  ;;  %v842_v46 = vld [vmem:[#allocation2 + $0x48] sm:$0xff] }
  0xa1   :  { %vm318_vm9 = vmand %vm316_vm4, %vm309_vm6  ;;  %v2148_v47 = vpack.c.bf16 %v842_v46, %v841_v45 }
  0xa2   :  { %vm317_vm10 = vcmp.le.f32.partialorder %v292_v53, 100.0  ;;  %vm322_vm11 = vmand %vm318_vm9, %vm320_vm5 }
  0xa3   :  { %vm319_vm12 = vmand %vm317_vm10, %vm310_vm8  ;;  %v324_v54 = vsel %vm322_vm11, 1.0, %v2269_v18 }
  0xa4   :  { %vm323_vm13 = vmand %vm319_vm12, %vm321_vm7 }
  0xa5   :  { %v325_v55 = vsel %vm323_vm13, 1.0, %v2269_v18 }
  0xa6   :  { %v2422_v56 = vpack.c.bf16 %v325_v55, %v324_v54  ;;  %v843_v54 = vld [vmem:[#allocation2 + $0x50] sm:$0xff]  ;;  %v844_v55 = vld [vmem:[#allocation2 + $0x58] sm:$0xff] }
  0xa8   :  { %1977 = vmatmul.mubr.msk.bf16.vlgmr.msra.gmra.mrb[4].mxu0 %vm328_vm14, %v2422_v56 }
  0xa9   :  { %2131 = vmatpush3.bf16.msra.mxu0 %v2128_v59  ;;  %v2156_v59 = vpack.c.bf16 %v938_v58, %v937_v57  ;;  %v1178_v57 = vld [vmem:[#allocation2 + $0xb0] sm:$0xff]  ;;  %v1179_v58 = vld [vmem:[#allocation2 + $0xb8] sm:$0xff] }
  0xaa   :  { %1990 = vmatprep.subr.msk.mxu0 %vm81_vm1, %v422_v8 }
  0xad   :  { %1991 = vmatpush3.msk.msra.mxu0 %vm81_vm1, %v422_v8  ;;  %vm507_vm1 = vcmask 48128  }
  0xae   :  { %1995 = vmatprep.subr.msk.mxu0 %vm514_vm15, %v419_v9 }
  0xee   :  { %v1962_v23 = vpop.f32.mrb[0].mxu0 }
  0xef   :  { %v157_v24 = vadd.f32 %v1962_v23, %v1796_v22  ;;  %v151_v25 = vpop.f32.mrb[1].mxu0 }
  0xf0   :  { %v152_v28 = vadd.f32 %v1796_v22, %v151_v25  ;;  %v608_v25 = vld [vmem:[#allocation2 + $0x18] sm:$0xff] }
  0xf1   :  { %v161_v31 = vmax.f32 %v157_v24, 0.0  ;;  %v607_v24 = vld [vmem:[#allocation2 + $0x10] sm:$0xff] }
  0xf2   :  { %v160_v30 = vmax.f32 %v152_v28, 0.0  ;;  %v2136_v26 = vpack.c.bf16 %v608_v25, %v607_v24 }
  0xf4   :  { %1971 = vmatprep.mubr.msk.f32.mxu1 %vm173_vm3, %v160_v30 }
  0xf5   :  { %1972 = vmatmul.mubr.msk.f32.vlgmr.msra.gmra.mrb[0].mxu1 %vm173_vm3, %v161_v31 }
  0xf6   :  { %1982 = vmatprep.mubr.msk.bf16.mxu1 %vm2270_vm2, %v2269_v18 }
 0x17b   :  { %v366_v4 = vpop.f32.mrb[4].mxu0 }
 0x17c   :  { %v1978_v5 = vpop.f32.mrb[5].mxu0  ;;  %v373_v22 = vadd.f32 %v366_v4, %v2387_v12  ;;  %v940_v4 = vld [vmem:[#allocation2 + $0x78] sm:$0xff] }
 0x17d   :  { %v369_v6 = vpop.f32.mrb[6].mxu0 }
 0x17e   :  { %v1979_v7 = vpop.f32.mrb[7].mxu0  ;;  %v374_v23 = vadd.f32 %v369_v6, %v2394_v15  ;;  %v745_v15 = vld [vmem:[#allocation2 + $0x20] sm:$0xff] }
 0x17f   :  { %v2140_v34 = vpack.c.bf16 %v746_v33, %v745_v15  ;;  %v1823_v6 = vld [vmem:[%s2577_s10 + $0x4] ss:$0 sm:$0xff] }
 0x180   :  { %v1080_v33 = vld [vmem:[#allocation2 + $0x80] sm:$0xff] }
 0x1c8   :  { %v1973_v61 = vpop.f32.mrb[0].mxu1 }
 0x1c9   :  { %v252_v62 = vadd.f32 %v1973_v61, %v1800_v60  ;;  %v246_v63 = vpop.f32.mrb[1].mxu1 }
 0x1ca   :  { %v247_v0 = vadd.f32 %v1800_v60, %v246_v63  ;;  %v1819_v60 = vld [vmem:[%s2577_s10 + $0x3] ss:$0 sm:$0xff] }
 0x1cb   :  { %v256_v1 = vmax.f32 %v252_v62, 0.0 }
 0x1cc   :  { %v255_v2 = vmax.f32 %v247_v0, 0.0 }
 0x1ce   :  { %v375_v3 = vpack.c.bf16 %v256_v1, %v255_v2 }
 0x1d0   :  { %1981 = vmatpush3.bf16.msra.mxu1 %v375_v3  ;;  %v939_v3 = vld [vmem:[#allocation2 + $0x70] sm:$0xff] }
 0x1d1   :  { %2133 = vmatprep.subr.bf16.mxu1 %v2132_v13  ;;  %v2160_v5 = vpack.c.bf16 %v940_v4, %v939_v3  ;;  %v1839_v3 = vld [vmem:[%s2577_s10 + $0x9] ss:$0 sm:$0xff] }
 0x1d3   :  { %1983 = vmatmul.mubr.msk.bf16.vlgmr.msra.gmra.mrb[4].mxu1 %vm328_vm14, %v2422_v56 }
 0x1d4   :  { %2135 = vmatpush3.bf16.msra.mxu1 %v2132_v13 }
 0x1d5   :  { %2137 = vmatprep.subr.bf16.mxu1 %v2136_v26 }
 0x1d8   :  { %2139 = vmatpush3.bf16.msra.mxu1 %v2136_v26 }
 0x1d9   :  { %2011 = vmatprep.subr.bf16.mxu1 %v2269_v18 }
 0x2a6   :  { %v410_v14 = vpop.f32.mrb[4].mxu1 }
 0x2a7   :  { %v417_v16 = vadd.f32 %v410_v14, %v255_v2  ;;  %v1984_v17 = vpop.f32.mrb[5].mxu1  ;;  %v1827_v14 = vld [vmem:[%s2577_s10 + $0x5] ss:$0 sm:$0xff] }
 0x2a8   :  { %v413_v19 = vpop.f32.mrb[6].mxu1 }
 0x2a9   :  { %v418_v20 = vadd.f32 %v413_v19, %v256_v1  ;;  %v1985_v21 = vpop.f32.mrb[7].mxu1  ;;  %1992 = vmatprep.mubr.msk.f32.mxu0 %vm74_vm0, %v417_v16 }
 0x2ab   :  { %1993 = vmatmul.mubr.msk.f32.vlgmr.msra.gmra.mrb[2].mxu0 %vm74_vm0, %v418_v20 }
 0x2ac   :  { %1996 = vmatpush3.msk.msra.mxu0 %vm514_vm15, %v419_v9  ;;  %1997 = vmatprep.mubr.msk.f32.mxu0 %vm507_vm1, %v373_v22 }
 0x2ad   :  { %2141 = vmatprep.subr.bf16.mxu0 %v2140_v34 }
 0x2b3   :  { %1998 = vmatmul.mubr.msk.f32.vlgmr.msra.gmra.mrb[2].mxu0 %vm507_vm1, %v374_v23 }
 0x2b4   :  { %2143 = vmatpush3.bf16.msra.mxu0 %v2140_v34  ;;  %v1081_v34 = vld [vmem:[#allocation2 + $0x88] sm:$0xff] }
 0x386   :  { %v1999_v12 = vpop.f32.mrb[2].mxu0 }
 0x387   :  { %v602_v28 = vadd.f32 %v1999_v12, %v1812_v27  ;;  %v584_v29 = vpop.f32.mrb[3].mxu0 }
 0x388   :  { %v601_v30 = vadd.f32 %v1812_v27, %v584_v29 }
 0x389   :  { %v604_v32 = vmax.f32 %v602_v28, 0.0 }
 0x38a   :  { %v603_v31 = vmax.f32 %v601_v30, 0.0 }
 0x38c   :  { %2008 = vmatprep.mubr.msk.f32.mxu1 %vm173_vm3, %v603_v31 }
 0x38d   :  { %2009 = vmatmul.mubr.msk.f32.vlgmr.msra.gmra.mrb[2].mxu1 %vm173_vm3, %v604_v32 }
 0x38e   :  { %2013 = vmatprep.mubr.msk.bf16.mxu1 %vm2270_vm2, %v2269_v18  ;;  %v747_v18 = vld [vmem:[#allocation2 + $0x30] sm:$0xff] }
 0x38f   :  { %v2144_v44 = vpack.c.bf16 %v748_v43, %v747_v18 }
 0x391   :  { %2145 = vmatprep.subr.bf16.mxu0 %v2144_v44 }
 0x392   :  { %2147 = vmatpush3.bf16.msra.mxu0 %v2144_v44 }
 0x393   :  { %2157 = vmatprep.subr.bf16.mxu0 %v2156_v59 }
 0x460   :  { %v2010_v36 = vpop.f32.mrb[2].mxu1 }
 0x461   :  { %v695_v37 = vadd.f32 %v2010_v36, %v1814_v35  ;;  %v689_v38 = vpop.f32.mrb[3].mxu1  ;;  %v1082_v36 = vld [vmem:[#allocation2 + $0x90] sm:$0xff] }
 0x462   :  { %v690_v39 = vadd.f32 %v1814_v35, %v689_v38  ;;  %v2164_v35 = vpack.c.bf16 %v1081_v34, %v1080_v33 }
 0x463   :  { %v699_v40 = vmax.f32 %v695_v37, 0.0  ;;  %v1083_v37 = vld [vmem:[#allocation2 + $0x98] sm:$0xff] }
 0x464   :  { %v698_v41 = vmax.f32 %v690_v39, 0.0  ;;  %v2168_v38 = vpack.c.bf16 %v1083_v37, %v1082_v36  ;;  %v1176_v39 = vld [vmem:[#allocation2 + $0xa0] sm:$0xff]  ;;  %v1844_v36 = vld [vmem:[%s2577_s10 + $0xa] ss:$0 sm:$0xff] }
 0x466   :  { %v700_v42 = vpack.c.bf16 %v699_v40, %v698_v41 }
 0x468   :  { %2012 = vmatpush3.bf16.msra.mxu1 %v700_v42 }
 0x469   :  { %2149 = vmatprep.subr.bf16.mxu1 %v2148_v47 }
 0x46b   :  { %2014 = vmatmul.mubr.msk.bf16.vlgmr.msra.gmra.mrb[8].mxu1 %vm328_vm14, %v2422_v56  ;;  %v2152_v56 = vpack.c.bf16 %v844_v55, %v843_v54 }
 0x46c   :  { %2151 = vmatpush3.bf16.msra.mxu1 %v2148_v47 }
 0x46d   :  { %2153 = vmatprep.subr.bf16.mxu1 %v2152_v56 }
 0x470   :  { %2155 = vmatpush3.bf16.msra.mxu1 %v2152_v56 }
 0x471   :  { %2165 = vmatprep.subr.bf16.mxu1 %v2164_v35 }
 0x53e   :  { %v735_v48 = vpop.f32.mrb[8].mxu1 }
 0x53f   :  { %v742_v49 = vadd.f32 %v735_v48, %v698_v41  ;;  %v2015_v50 = vpop.f32.mrb[9].mxu1  ;;  %v1832_v48 = vld [vmem:[%s2577_s10 + $0x6] ss:$0 sm:$0xff] }
 0x540   :  { %v738_v51 = vpop.f32.mrb[10].mxu1  ;;  %v1833_v50 = vld [vmem:[%s2577_s10 + $0x7] ss:$0 sm:$0xff] }
 0x541   :  { %v743_v52 = vadd.f32 %v738_v51, %v699_v40  ;;  %v2016_v53 = vpop.f32.mrb[11].mxu1  ;;  %2025 = vmatprep.mubr.msk.f32.mxu0 %vm173_vm3, %v742_v49  ;;  %v1177_v40 = vld [vmem:[#allocation2 + $0xa8] sm:$0xff] }
 0x542   :  { %v2172_v41 = vpack.c.bf16 %v1177_v40, %v1176_v39  ;;  %v1845_v40 = vld [vmem:[%s2577_s10 + $0xb] ss:$0 sm:$0xff] }
 0x543   :  { %2026 = vmatmul.mubr.msk.f32.vlgmr.msra.gmra.mrb[8].mxu0 %vm173_vm3, %v743_v52 }
 0x544   :  { %2159 = vmatpush3.bf16.msra.mxu0 %v2156_v59  ;;  %v2176_v59 = vpack.c.bf16 %v1179_v58, %v1178_v57 }
 0x545   :  { %2161 = vmatprep.subr.bf16.mxu0 %v2160_v5 }
 0x548   :  { %2163 = vmatpush3.bf16.msra.mxu0 %v2160_v5 }
 0x549   :  { %2173 = vmatprep.subr.bf16.mxu0 %v2172_v41 }
 0x616   :  { %v2027_v61 = vpop.f32.mrb[8].mxu0 }
 0x617   :  { %v835_v62 = vadd.f32 %v2027_v61, %v1819_v60  ;;  %v829_v63 = vpop.f32.mrb[9].mxu0 }
 0x618   :  { %v830_v0 = vadd.f32 %v1819_v60, %v829_v63  ;;  %v1835_v60 = vld [vmem:[%s2577_s10 + $0x8] ss:$0 sm:$0xff] }
 0x619   :  { %v839_v2 = vmax.f32 %v835_v62, 0.0 }
 0x61a   :  { %v838_v1 = vmax.f32 %v830_v0, 0.0 }
 0x61c   :  { %2036 = vmatprep.mubr.msk.f32.mxu1 %vm173_vm3, %v838_v1 }
 0x61d   :  { %2037 = vmatmul.mubr.msk.f32.vlgmr.msra.gmra.mrb[12].mxu1 %vm173_vm3, %v839_v2 }
 0x61e   :  { %2167 = vmatpush3.bf16.msra.mxu1 %v2164_v35 }
 0x61f   :  { %2169 = vmatprep.subr.bf16.mxu1 %v2168_v38 }
 0x622   :  { %2171 = vmatpush3.bf16.msra.mxu1 %v2168_v38 }
 0x6f0   :  { %v2038_v7 = vpop.f32.mrb[12].mxu1 }
 0x6f1   :  { %v931_v8 = vadd.f32 %v2038_v7, %v1823_v6  ;;  %v925_v9 = vpop.f32.mrb[13].mxu1 }
 0x6f2   :  { %v926_v10 = vadd.f32 %v1823_v6, %v925_v9 }
 0x6f3   :  { %v935_v13 = vmax.f32 %v931_v8, 0.0 }
 0x6f4   :  { %v934_v11 = vmax.f32 %v926_v10, 0.0 }
 0x6f6   :  { %2047 = vmatprep.mubr.msk.f32.mxu0 %vm173_vm3, %v934_v11 }
 0x6f7   :  { %2048 = vmatmul.mubr.msk.f32.vlgmr.msra.gmra.mrb[10].mxu0 %vm173_vm3, %v935_v13 }
 0x6f8   :  { %2175 = vmatpush3.bf16.msra.mxu0 %v2172_v41 }
 0x6f9   :  { %2177 = vmatprep.subr.bf16.mxu0 %v2176_v59 }
 0x6fc   :  { %2179 = vmatpush3.bf16.msra.mxu0 %v2176_v59 }
 0x7ca   :  { %v2049_v16 = vpop.f32.mrb[10].mxu0 }
 0x7cb   :  { %v1027_v17 = vadd.f32 %v2049_v16, %v1827_v14  ;;  %v1021_v19 = vpop.f32.mrb[11].mxu0 }
 0x7cc   :  { %v1022_v20 = vadd.f32 %v1827_v14, %v1021_v19 }
 0x7cd   :  { %v1031_v21 = vadd.f32 %v1027_v17, %v935_v13 }
 0x7ce   :  { %v1030_v22 = vadd.f32 %v1022_v20, %v934_v11 }
 0x7cf   :  { %v1039_v23 = vsel %vm173_vm3, %v1031_v21, 0.0 }
 0x7d0   :  { %1040 = vadd.xlane.f32.xlu1 %v1039_v23  ;;  %v1036_v24 = vsel %vm173_vm3, %v1030_v22, 0.0 }
 0x7d1   :  { %1037 = vadd.xlane.f32.xlu0 %v1036_v24 }
 0x85d   :  { %v1041_v25 = vpop.xlane.xlu1 %1040 }
 0x85e   :  { %v1044_v26 = vmul.f32 0.03125, %v1041_v25  ;;  %v1038_v27 = vpop.xlane.xlu0 %1037  ;;  %v1318_v25 = vld [vmem:[#allocation2 + $0xc0] sm:$0xff] }
 0x85f   :  { %v1043_v12 = vmul.f32 0.03125, %v1038_v27 }
 0x860   :  { %v1046_v28 = vsub.f32 %v1031_v21, %v1044_v26  ;;  %v1319_v26 = vld [vmem:[#allocation2 + $0xc8] sm:$0xff] }
 0x861   :  { %v1045_v29 = vsub.f32 %v1030_v22, %v1043_v12  ;;  %v2180_v27 = vpack.c.bf16 %v1319_v26, %v1318_v25  ;;  %v1320_v12 = vld [vmem:[#allocation2 + $0xd0] sm:$0xff] }
 0x862   :  { %v1048_v32 = vmul.f32 %v1046_v28, %v1046_v28 }
 0x863   :  { %v1047_v30 = vmul.f32 %v1045_v29, %v1045_v29  ;;  %2181 = vmatprep.subr.bf16.mxu1 %v2180_v27 }
 0x864   :  { %v1052_v15 = vsel %vm173_vm3, %v1048_v32, 0.0 }
 0x865   :  { %v1049_v31 = vsel %vm173_vm3, %v1047_v30, 0.0 }
 0x866   :  { %1050 = vadd.xlane.f32.xlu0 %v1049_v31 }
 0x86a   :  { %1053 = vadd.xlane.f32.xlu0 %v1052_v15 }
 0x8f3   :  { %v1051_v42 = vpop.xlane.xlu0 %1050 }
 0x8f4   :  { %v1055_v18 = vmul.f32 0.03125, %v1051_v42 }
 0x8f6   :  { %v1057_v43 = vadd.f32 1e-05, %v1055_v18 }
 0x8f7   :  { %v1054_v44 = vpop.xlane.xlu0 %1053 }
 0x8f8   :  { %2224 = vrsqrt.f32 %v1057_v43  ;;  %v1056_v45 = vmul.f32 0.03125, %v1054_v44  ;;  %v1847_v44 = vld [vmem:[%s2577_s10 + $0xc] ss:$0 sm:$0xff] }
 0x8fa   :  { %v1058_v46 = vadd.f32 1e-05, %v1056_v45 }
 0x8fc   :  { %2226 = vrsqrt.f32 %v1058_v46 }
 0x902   :  { %v2225_v47 = vpop.eup %2224 }
 0x903   :  { %v1061_v49 = vmul.f32 %v2225_v47, %v1045_v29 }
 0x905   :  { %v1069_v51 = vmul.f32 %v1832_v48, %v1061_v49 }
 0x906   :  { %v2227_v52 = vpop.eup %2226 }
 0x907   :  { %v1062_v53 = vmul.f32 %v2227_v52, %v1046_v28  ;;  %v1077_v54 = vadd.f32 %v1833_v50, %v1069_v51  ;;  %v1321_v28 = vld [vmem:[#allocation2 + $0xd8] sm:$0xff] }
 0x908   :  { %v2184_v29 = vpack.c.bf16 %v1321_v28, %v1320_v12  ;;  %v1559_v12 = vld [vmem:[#allocation2 + $0x118] sm:$0xff] }
 0x909   :  { %v1070_v55 = vmul.f32 %v1832_v48, %v1062_v53  ;;  %2058 = vmatprep.mubr.msk.f32.mxu1 %vm173_vm3, %v1077_v54 }
 0x90b   :  { %v1078_v56 = vadd.f32 %v1833_v50, %v1070_v55 }
 0x90d   :  { %2059 = vmatmul.mubr.msk.f32.vlgmr.msra.gmra.mrb[14].mxu1 %vm173_vm3, %v1078_v56 }
 0x90e   :  { %2183 = vmatpush3.bf16.msra.mxu1 %v2180_v27  ;;  %v1558_v27 = vld [vmem:[#allocation2 + $0x110] sm:$0xff] }
 0x90f   :  { %2185 = vmatprep.subr.bf16.mxu1 %v2184_v29  ;;  %v2200_v28 = vpack.c.bf16 %v1559_v12, %v1558_v27 }
 0x912   :  { %2187 = vmatpush3.bf16.msra.mxu1 %v2184_v29  ;;  %v1855_v29 = vld [vmem:[%s2577_s10 + $0xf] ss:$0 sm:$0xff] }
 0x9e0   :  { %v2060_v61 = vpop.f32.mrb[14].mxu1 }
 0x9e1   :  { %v1170_v62 = vadd.f32 %v2060_v61, %v1835_v60  ;;  %v1164_v63 = vpop.f32.mrb[15].mxu1 }
 0x9e2   :  { %v1165_v0 = vadd.f32 %v1835_v60, %v1164_v63  ;;  %v1460_v63 = vld [vmem:[#allocation2 + $0xe0] sm:$0xff] }
 0x9e3   :  { %v1174_v2 = vmax.f32 %v1170_v62, 0.0 }
 0x9e4   :  { %v1173_v1 = vmax.f32 %v1165_v0, 0.0  ;;  %v1461_v0 = vld [vmem:[#allocation2 + $0xe8] sm:$0xff] }
 0x9e6   :  { %2069 = vmatprep.mubr.msk.f32.mxu0 %vm173_vm3, %v1173_v1  ;;  %v2188_v1 = vpack.c.bf16 %v1461_v0, %v1460_v63 }
 0x9e7   :  { %2070 = vmatmul.mubr.msk.f32.vlgmr.msra.gmra.mrb[12].mxu0 %vm173_vm3, %v1174_v2  ;;  %v1462_v2 = vld [vmem:[#allocation2 + $0xf0] sm:$0xff] }
 0x9e8   :  { %2189 = vmatprep.subr.bf16.mxu0 %v2188_v1 }
 0x9e9   :  { %2191 = vmatpush3.bf16.msra.mxu0 %v2188_v1 }
 0xaba   :  { %v2071_v4 = vpop.f32.mrb[12].mxu0 }
 0xabb   :  { %v1266_v5 = vadd.f32 %v2071_v4, %v1839_v3  ;;  %v1260_v6 = vpop.f32.mrb[13].mxu0 }
 0xabc   :  { %v1261_v7 = vadd.f32 %v1839_v3, %v1260_v6  ;;  %v1463_v3 = vld [vmem:[#allocation2 + $0xf8] sm:$0xff]  ;;  %v1557_v6 = vld [vmem:[#allocation2 + $0x108] sm:$0xff] }
 0xabd   :  { %v1270_v8 = vadd.f32 %v1266_v5, %v1078_v56  ;;  %v2192_v4 = vpack.c.bf16 %v1463_v3, %v1462_v2  ;;  %v1556_v5 = vld [vmem:[#allocation2 + $0x100] sm:$0xff]  ;;  %v1864_v2 = vld [vmem:[%s2577_s10 + $0x11] ss:$0 sm:$0xff] }
 0xabe   :  { %v1269_v9 = vadd.f32 %v1261_v7, %v1077_v54  ;;  %v2196_v7 = vpack.c.bf16 %v1557_v6, %v1556_v5  ;;  %v1865_v6 = vld [vmem:[%s2577_s10 + $0x12] ss:$0 sm:$0xff] }
 0xabf   :  { %v1278_v10 = vsel %vm173_vm3, %v1270_v8, 0.0  ;;  %2193 = vmatprep.subr.bf16.mxu0 %v2192_v4 }
 0xac0   :  { %1279 = vadd.xlane.f32.xlu0 %v1278_v10  ;;  %v1275_v11 = vsel %vm173_vm3, %v1269_v9, 0.0  ;;  %2195 = vmatpush3.bf16.msra.mxu0 %v2192_v4 }
 0xac1   :  { %1276 = vadd.xlane.f32.xlu1 %v1275_v11  ;;  %2197 = vmatprep.subr.bf16.mxu1 %v2196_v7 }
 0xb4d   :  { %v1280_v13 = vpop.xlane.xlu0 %1279 }
 0xb4e   :  { %v1282_v14 = vmul.f32 0.03125, %v1280_v13  ;;  %v1277_v16 = vpop.xlane.xlu1 %1276 }
 0xb4f   :  { %v1281_v17 = vmul.f32 0.03125, %v1277_v16 }
 0xb50   :  { %v1284_v19 = vsub.f32 %v1270_v8, %v1282_v14 }
 0xb51   :  { %v1283_v20 = vsub.f32 %v1269_v9, %v1281_v17  ;;  %v1852_v17 = vld [vmem:[%s2577_s10 + $0xd] ss:$0 sm:$0xff] }
 0xb52   :  { %v1286_v21 = vmul.f32 %v1284_v19, %v1284_v19 }
 0xb53   :  { %v1285_v22 = vmul.f32 %v1283_v20, %v1283_v20 }
 0xb54   :  { %v1290_v23 = vsel %vm173_vm3, %v1286_v21, 0.0 }
 0xb55   :  { %1291 = vadd.xlane.f32.xlu0 %v1290_v23  ;;  %v1287_v24 = vsel %vm173_vm3, %v1285_v22, 0.0  ;;  %v1853_v22 = vld [vmem:[%s2577_s10 + $0xe] ss:$0 sm:$0xff] }
 0xb56   :  { %1288 = vadd.xlane.f32.xlu1 %v1287_v24 }
 0xbe2   :  { %v1292_v30 = vpop.xlane.xlu0 %1291 }
 0xbe3   :  { %v1294_v31 = vmul.f32 0.03125, %v1292_v30  ;;  %v1289_v32 = vpop.xlane.xlu1 %1288 }
 0xbe4   :  { %v1293_v15 = vmul.f32 0.03125, %v1289_v32 }
 0xbe5   :  { %v1296_v33 = vadd.f32 1e-05, %v1294_v31 }
 0xbe6   :  { %v1295_v34 = vadd.f32 1e-05, %v1293_v15 }
 0xbe7   :  { %2228 = vrsqrt.f32 %v1296_v33 }
 0xbe8   :  { %2230 = vrsqrt.f32 %v1295_v34 }
 0xbf1   :  { %v2229_v35 = vpop.eup %2228 }
 0xbf2   :  { %v2231_v37 = vpop.eup %2230  ;;  %v1300_v38 = vmul.f32 %v2229_v35, %v1284_v19  ;;  %v1859_v35 = vld [vmem:[%s2577_s10 + $0x10] ss:$0 sm:$0xff] }
 0xbf3   :  { %v1299_v39 = vmul.f32 %v2231_v37, %v1283_v20 }
 0xbf4   :  { %v1308_v41 = vmul.f32 %v1844_v36, %v1300_v38 }
 0xbf5   :  { %v1307_v42 = vmul.f32 %v1844_v36, %v1299_v39 }
 0xbf6   :  { %v1316_v43 = vadd.f32 %v1845_v40, %v1308_v41 }
 0xbf7   :  { %v1315_v18 = vadd.f32 %v1845_v40, %v1307_v42 }
 0xbf9   :  { %2080 = vmatprep.mubr.msk.f32.mxu1 %vm173_vm3, %v1315_v18 }
 0xbfa   :  { %2081 = vmatmul.mubr.msk.f32.vlgmr.msra.gmra.mrb[16].mxu1 %vm173_vm3, %v1316_v43 }
 0xbfb   :  { %2199 = vmatpush3.bf16.msra.mxu1 %v2196_v7 }
 0xbfc   :  { %2201 = vmatprep.subr.bf16.mxu1 %v2200_v28 }
 0xbff   :  { %2203 = vmatpush3.bf16.msra.mxu1 %v2200_v28 }
 0xccd   :  { %v2082_v45 = vpop.f32.mrb[16].mxu1 }
 0xcce   :  { %v1408_v46 = vadd.f32 %v2082_v45, %v1847_v44  ;;  %v1402_v47 = vpop.f32.mrb[17].mxu1 }
 0xccf   :  { %v1403_v48 = vadd.f32 %v1847_v44, %v1402_v47 }
 0xcd0   :  { %v1412_v49 = vadd.f32 %v1408_v46, %v1316_v43 }
 0xcd1   :  { %v1411_v50 = vadd.f32 %v1403_v48, %v1315_v18 }
 0xcd2   :  { %v1420_v51 = vsel %vm173_vm3, %v1412_v49, 0.0 }
 0xcd3   :  { %1421 = vadd.xlane.f32.xlu0 %v1420_v51  ;;  %v1417_v52 = vsel %vm173_vm3, %v1411_v50, 0.0 }
 0xcd4   :  { %1418 = vadd.xlane.f32.xlu1 %v1417_v52 }
 0xd60   :  { %v1422_v53 = vpop.xlane.xlu0 %1421 }
 0xd61   :  { %v1424_v54 = vmul.f32 0.03125, %v1422_v53  ;;  %v1419_v55 = vpop.xlane.xlu1 %1418  ;;  %v1697_v53 = vld [vmem:[%s2578_s11] sm:$0xff] }
 0xd62   :  { %v1423_v56 = vmul.f32 0.03125, %v1419_v55 }
 0xd63   :  { %v1426_v57 = vsub.f32 %v1412_v49, %v1424_v54  ;;  %v1698_v54 = vld [vmem:[%s2578_s11 + $0x8] sm:$0xff] }
 0xd64   :  { %v1425_v58 = vsub.f32 %v1411_v50, %v1423_v56  ;;  %v2204_v55 = vpack.c.bf16 %v1698_v54, %v1697_v53  ;;  %v1699_v56 = vld [vmem:[%s2578_s11 + $0x10] sm:$0xff] }
 0xd65   :  { %v1428_v59 = vmul.f32 %v1426_v57, %v1426_v57 }
 0xd66   :  { %v1427_v60 = vmul.f32 %v1425_v58, %v1425_v58  ;;  %2205 = vmatprep.subr.bf16.mxu0 %v2204_v55 }
 0xd67   :  { %v1432_v61 = vsel %vm173_vm3, %v1428_v59, 0.0 }
 0xd68   :  { %1433 = vadd.xlane.f32.xlu0 %v1432_v61  ;;  %v1429_v62 = vsel %vm173_vm3, %v1427_v60, 0.0 }
 0xd69   :  { %1430 = vadd.xlane.f32.xlu1 %v1429_v62 }
 0xdf5   :  { %v1434_v8 = vpop.xlane.xlu0 %1433 }
 0xdf6   :  { %v1436_v9 = vmul.f32 0.03125, %v1434_v8  ;;  %v1431_v10 = vpop.xlane.xlu1 %1430 }
 0xdf7   :  { %v1435_v11 = vmul.f32 0.03125, %v1431_v10 }
 0xdf8   :  { %v1438_v13 = vadd.f32 1e-05, %v1436_v9 }
 0xdf9   :  { %v1437_v14 = vadd.f32 1e-05, %v1435_v11  ;;  %v1866_v11 = vld [vmem:[%s2579_s12] ss:$0 sm:$0xff] }
 0xdfa   :  { %2232 = vrsqrt.f32 %v1438_v13 }
 0xdfb   :  { %2234 = vrsqrt.f32 %v1437_v14 }
 0xe04   :  { %v2233_v16 = vpop.eup %2232 }
 0xe05   :  { %v2235_v19 = vpop.eup %2234  ;;  %v1442_v20 = vmul.f32 %v2233_v16, %v1426_v57  ;;  %v1700_v57 = vld [vmem:[%s2578_s11 + $0x18] sm:$0xff] }
 0xe06   :  { %v1441_v21 = vmul.f32 %v2235_v19, %v1425_v58  ;;  %v2208_v58 = vpack.c.bf16 %v1700_v57, %v1699_v56 }
 0xe07   :  { %v1450_v23 = vmul.f32 %v1852_v17, %v1442_v20 }
 0xe08   :  { %v1449_v24 = vmul.f32 %v1852_v17, %v1441_v21 }
 0xe09   :  { %v1458_v26 = vadd.f32 %v1853_v22, %v1450_v23 }
 0xe0a   :  { %v1457_v25 = vadd.f32 %v1853_v22, %v1449_v24 }
 0xe0c   :  { %2091 = vmatprep.mubr.msk.f32.mxu0 %vm173_vm3, %v1457_v25 }
 0xe0d   :  { %2092 = vmatmul.mubr.msk.f32.vlgmr.msra.gmra.mrb[14].mxu0 %vm173_vm3, %v1458_v26 }
 0xe0e   :  { %2207 = vmatpush3.bf16.msra.mxu0 %v2204_v55 }
 0xe0f   :  { %2209 = vmatprep.subr.bf16.mxu0 %v2208_v58 }
 0xe12   :  { %2211 = vmatpush3.bf16.msra.mxu0 %v2208_v58 }
 0xee0   :  { %v2093_v30 = vpop.f32.mrb[14].mxu0 }
 0xee1   :  { %v1550_v31 = vadd.f32 %v2093_v30, %v1855_v29  ;;  %v1544_v32 = vpop.f32.mrb[15].mxu0 }
 0xee2   :  { %v1545_v15 = vadd.f32 %v1855_v29, %v1544_v32 }
 0xee3   :  { %v1554_v34 = vmax.f32 %v1550_v31, 0.0 }
 0xee4   :  { %v1553_v33 = vmax.f32 %v1545_v15, 0.0 }
 0xee6   :  { %2102 = vmatprep.mubr.msk.f32.mxu1 %vm173_vm3, %v1553_v33 }
 0xee7   :  { %2103 = vmatmul.mubr.msk.f32.vlgmr.msra.gmra.mrb[18].mxu1 %vm173_vm3, %v1554_v34 }
 0xfba   :  { %v2104_v36 = vpop.f32.mrb[18].mxu1 }
 0xfbb   :  { %v1646_v37 = vadd.f32 %v2104_v36, %v1859_v35  ;;  %v1640_v38 = vpop.f32.mrb[19].mxu1 }
 0xfbc   :  { %v1641_v39 = vadd.f32 %v1859_v35, %v1640_v38 }
 0xfbd   :  { %v1650_v40 = vadd.f32 %v1646_v37, %v1458_v26 }
 0xfbe   :  { %v1649_v41 = vadd.f32 %v1641_v39, %v1457_v25 }
 0xfbf   :  { %v1658_v42 = vsel %vm173_vm3, %v1650_v40, 0.0 }
 0xfc0   :  { %1659 = vadd.xlane.f32.xlu0 %v1658_v42  ;;  %v1655_v18 = vsel %vm173_vm3, %v1649_v41, 0.0 }
 0xfc1   :  { %1656 = vadd.xlane.f32.xlu1 %v1655_v18 }
0x104d   :  { %v1660_v43 = vpop.xlane.xlu0 %1659 }
0x104e   :  { %v1662_v44 = vmul.f32 0.03125, %v1660_v43  ;;  %v1657_v45 = vpop.xlane.xlu1 %1656 }
0x104f   :  { %v1661_v46 = vmul.f32 0.03125, %v1657_v45 }
0x1050   :  { %v1664_v47 = vsub.f32 %v1650_v40, %v1662_v44 }
0x1051   :  { %v1663_v48 = vsub.f32 %v1649_v41, %v1661_v46 }
0x1052   :  { %v1666_v49 = vmul.f32 %v1664_v47, %v1664_v47 }
0x1053   :  { %v1665_v50 = vmul.f32 %v1663_v48, %v1663_v48 }
0x1054   :  { %v1670_v51 = vsel %vm173_vm3, %v1666_v49, 0.0 }
0x1055   :  { %1671 = vadd.xlane.f32.xlu0 %v1670_v51  ;;  %v1667_v52 = vsel %vm173_vm3, %v1665_v50, 0.0 }
0x1056   :  { %1668 = vadd.xlane.f32.xlu1 %v1667_v52 }
0x10e2   :  { %v1672_v59 = vpop.xlane.xlu0 %1671 }
0x10e3   :  { %v1674_v60 = vmul.f32 0.03125, %v1672_v59  ;;  %v1669_v61 = vpop.xlane.xlu1 %1668 }
0x10e4   :  { %v1673_v62 = vmul.f32 0.03125, %v1669_v61 }
0x10e5   :  { %v1676_v63 = vadd.f32 1e-05, %v1674_v60 }
0x10e6   :  { %v1675_v0 = vadd.f32 1e-05, %v1673_v62 }
0x10e7   :  { %2236 = vrsqrt.f32 %v1676_v63 }
0x10e8   :  { %2238 = vrsqrt.f32 %v1675_v0 }
0x10f1   :  { %v2237_v1 = vpop.eup %2236 }
0x10f2   :  { %v2239_v3 = vpop.eup %2238  ;;  %v1680_v4 = vmul.f32 %v2237_v1, %v1664_v47 }
0x10f3   :  { %v1679_v5 = vmul.f32 %v2239_v3, %v1663_v48 }
0x10f4   :  { %v1688_v7 = vmul.f32 %v1864_v2, %v1680_v4 }
0x10f5   :  { %v1687_v8 = vmul.f32 %v1864_v2, %v1679_v5 }
0x10f6   :  { %v1696_v10 = vadd.f32 %v1865_v6, %v1688_v7 }
0x10f7   :  { %v1695_v9 = vadd.f32 %v1865_v6, %v1687_v8 }
0x10f9   :  { %2113 = vmatprep.mubr.msk.f32.mxu0 %vm173_vm3, %v1695_v9 }
0x10fa   :  { %2114 = vmatmul.mubr.msk.f32.vlgmr.msra.gmra.mrb[16].mxu0 %vm173_vm3, %v1696_v10 }
0x11cd   :  { %v2115_v13 = vpop.f32.mrb[16].mxu0 }
0x11ce   :  { %v1786_v14 = vadd.f32 %v2115_v13, %v1866_v11  ;;  %v1780_v16 = vpop.f32.mrb[17].mxu0 }
0x11cf   :  { %v1781_v17 = vadd.f32 %v1866_v11, %v1780_v16 }
0x11d0   :  { %1790 = vst [vmem:[%s2580_s13 + $0x8] sm:$0xff] %v1786_v14 }
0x11d1   :  { %1789 = vst [vmem:[%s2580_s13] sm:$0xff] %v1781_v17 }
0x11d2   :  { %1795 = vsyncpa [#allocation3], 1 }

</bundles_post_ra>
